<compile_context>
chip_gen: v7x
topology: tpu7x:2x2x1
jax: 0.10.0
libtpu: 0.0.40
codegen_flags: <defaults>
</compile_context>

<pallas_src>
import functools

import jax
import jax.numpy as jnp
from jax.experimental import pallas as pl
from jax.experimental.pallas import tpu as pltpu


TOKEN_SELF_ATTN_VALUE = -5e4                                  # reformer_pytorch constant
MASK_VALUE = -0.5 * float(jnp.finfo(jnp.float32).max)


def _round_up(x, m):
    return ((x + m - 1) // m) * m


def _shared_qk_flash_kernel(q_ref, k_ref, v_ref, o_ref, m_ref, l_ref, acc_ref,
                            *, causal, tile_q, tile_kv, heads, dim_head,
                            kv_valid, mask_kv_pad):
    # q_ref: (1, H, Tq, Dh) bf16     k_ref/v_ref: (1, H, Tkv, Dh) bf16
    # o_ref: (1, Tq, H*Dh)           m_ref/l_ref: (H, Tq, 1) f32   acc_ref: (H, Tq, Dh) f32
    qi = pl.program_id(1)
    ki = pl.program_id(2)
    nk = pl.num_programs(2)

    @pl.when(ki == 0)
    def _init():
        m_ref[...] = jnp.full(m_ref.shape, -jnp.inf, dtype=jnp.float32)
        l_ref[...] = jnp.zeros(l_ref.shape, dtype=jnp.float32)
        acc_ref[...] = jnp.zeros(acc_ref.shape, dtype=jnp.float32)

    q_start = qi * tile_q
    k_start = ki * tile_kv

    def _accumulate(apply_diag_masks):
        q = q_ref[0]                                  # (H, Tq, Dh) bf16, scale pre-folded
        # In-kernel shared-QK key normalization (f32 math, EUP rsqrt), cast back to bf16
        # for the MXU.  Matches reference qk / max(||qk||, 1e-12).
        k_raw = k_ref[0].astype(jnp.float32)          # (H, Tkv, Dh)
        inv_norm = jax.lax.rsqrt(
            jnp.maximum(jnp.sum(k_raw * k_raw, axis=-1, keepdims=True), 1e-24))
        k = (k_raw * inv_norm).astype(q.dtype)
        v = v_ref[0]                                  # (H, Tkv, Dh) bf16

        # s[h,i,j] = sum_d q[h,i,d] * k[h,j,d]; bf16 inputs, f32 accumulation.
        s = jax.lax.dot_general(q, k, (((2,), (2,)), ((0,), (0,))),
                                preferred_element_type=jnp.float32)   # (H, Tq, Tkv) f32

        if mask_kv_pad or apply_diag_masks:
            col = k_start + jax.lax.broadcasted_iota(jnp.int32, (tile_q, tile_kv), 1)
        if mask_kv_pad:   # mask kv columns added only for kernel tiling (static flag)
            s = jnp.where((col < kv_valid)[None], s, MASK_VALUE)
        if apply_diag_masks:
            row = q_start + jax.lax.broadcasted_iota(jnp.int32, (tile_q, tile_kv), 0)
            # shared-QK attention: a token does not attend to itself
            s = jnp.where((col == row)[None], TOKEN_SELF_ATTN_VALUE, s)
            if causal:
                s = jnp.where((col > row)[None], MASK_VALUE, s)

        m_prev = m_ref[...]                                            # (H, Tq, 1)
        m_new = jnp.maximum(m_prev, jnp.max(s, axis=-1, keepdims=True))
        alpha = jnp.exp(m_prev - m_new)
        p = jnp.exp(s - m_new)                                         # (H, Tq, Tkv) f32

        l_ref[...] = alpha * l_ref[...] + jnp.sum(p, axis=-1, keepdims=True)
        acc_ref[...] = alpha * acc_ref[...] + jax.lax.dot_general(
            p.astype(v.dtype), v, (((2,), (1,)), ((0,), (0,))),        # bf16 PV matmul
            preferred_element_type=jnp.float32)                        # (H, Tq, Dh) f32
        m_ref[...] = m_new

    # Tile classification relative to the diagonal (scalar predicates):
    #   - diag_straddle: the diagonal intersects this (q tile, kv tile) block -> masks
    #   - causal: blocks entirely above the diagonal are skipped (and their k/v
    #     index_maps are clamped in the wrapper so no DMA is issued for them).
    diag_straddle = jnp.logical_and(k_start <= q_start + (tile_q - 1),
                                    q_start <= k_start + (tile_kv - 1))
    if causal:
        run = k_start <= q_start + (tile_q - 1)
        masked_pred = diag_straddle                      # implies `run`
        unmasked_pred = jnp.logical_and(run, jnp.logical_not(diag_straddle))
    else:
        masked_pred = diag_straddle
        unmasked_pred = jnp.logical_not(diag_straddle)

    @pl.when(masked_pred)
    def _run_masked():
        _accumulate(True)

    @pl.when(unmasked_pred)
    def _run_unmasked():
        _accumulate(False)

    @pl.when(ki == nk - 1)
    def _finalize():
        inv_l = pl.reciprocal(l_ref[...], approx=True)                 # EUP reciprocal
        for h in range(heads):   # write into a lane-dense (Tq, H*Dh) output slab
            o_ref[0, :, pl.ds(h * dim_head, dim_head)] = (
                acc_ref[h] * inv_l[h]).astype(o_ref.dtype)


def shared_qk_attention(qk, v, *, causal=False, tile_q=1024, tile_kv=512,
                        compute_dtype=jnp.bfloat16):
    """qk: (B, H, N, Dh) shared-QK tensor (softmax scale already folded in),
       v: (B, H, N, Dh).  Returns attention output in (B, N, H*Dh) layout."""
    B, H, N, Dh = qk.shape
    base = _round_up(N, 8)
    Tq = min(tile_q, base)
    Tkv = min(tile_kv, base)
    assert max(Tq, Tkv) % min(Tq, Tkv) == 0, "tile_q / tile_kv must nest"
    Np = _round_up(_round_up(N, Tq), Tkv)

    if Np != N:
        pad = ((0, 0), (0, 0), (0, Np - N), (0, 0))
        qk = jnp.pad(qk, pad)
        v = jnp.pad(v, pad)

    # bf16 MXU feeds (all score/softmax math stays f32 inside the kernel).
    qk = qk.astype(compute_dtype)
    v = v.astype(compute_dtype)

    kernel = functools.partial(
        _shared_qk_flash_kernel,
        causal=causal, tile_q=Tq, tile_kv=Tkv, heads=H, dim_head=Dh,
        kv_valid=N, mask_kv_pad=(Np != N))

    q_map = lambda b, qi, ki: (b, 0, qi, 0)
    if causal:
        # Clamp skipped above-diagonal kv tiles to the last needed one: the block
        # index repeats, so Pallas issues no new DMA for compute-skipped steps.
        def kv_map(b, qi, ki):
            last_needed = ((qi + 1) * Tq - 1) // Tkv
            return (b, 0, jnp.minimum(ki, last_needed), 0)
    else:
        kv_map = lambda b, qi, ki: (b, 0, ki, 0)

    out = pl.pallas_call(
        kernel,
        out_shape=jax.ShapeDtypeStruct((B, Np, H * Dh), compute_dtype),
        grid_spec=pltpu.PrefetchScalarGridSpec(
            num_scalar_prefetch=0,
            # grid: B and q tiles are parallel (keeps both v7x TCs busy when
            # B * (Np // Tq) >= 2); kv axis is last / "arbitrary" (online softmax).
            grid=(B, Np // Tq, Np // Tkv),
            in_specs=[
                pl.BlockSpec((1, H, Tq, Dh), q_map),     # q  (= shared qk)
                pl.BlockSpec((1, H, Tkv, Dh), kv_map),   # k  (= same qk array, normalized in-kernel)
                pl.BlockSpec((1, H, Tkv, Dh), kv_map),   # v
            ],
            out_specs=pl.BlockSpec((1, Tq, H * Dh), lambda b, qi, ki: (b, qi, 0)),
            scratch_shapes=[
                pltpu.VMEM((H, Tq, 1), jnp.float32),    # running max m   (lane-padded)
                pltpu.VMEM((H, Tq, 1), jnp.float32),    # running denom l (lane-padded)
                pltpu.VMEM((H, Tq, Dh), jnp.float32),   # output accumulator
            ],
        ),
        compiler_params=pltpu.CompilerParams(
            dimension_semantics=("parallel", "parallel", "arbitrary"),
            # 48 MiB: leaves headroom on v7x (64 MiB physical VMEM per TC) while still
            # allowing large q tiles on v5e/v6e (128 MiB).
            vmem_limit_bytes=48 * 1024 * 1024),
    )(qk, qk, v)
    return out[:, :N, :]


def reformer_layer_forward(queries, keys, values, attn_mask, tau, delta, params,
                           *, n_heads, bucket_size, causal=False):
    """ReformerLayer.forward: keys/values/attn_mask/tau/delta are ignored by the
       original module (LSH self-attention runs on `queries` only)."""
    del keys, values, attn_mask, tau, delta
    B, N, C = queries.shape
    H = n_heads
    dh = C // H
    scale = dh ** -0.5

    # fit_length: zero-pad to a multiple of 2*bucket_size
    m2 = 2 * bucket_size
    n_fit = _round_up(N, m2)
    x = queries
    if n_fit != N:
        x = jnp.pad(x, ((0, 0), (0, n_fit - N), (0, 0)))

    # Fused shared-QK / value projection (single GEMM, bias-free); softmax scale is
    # folded into W_qk (normalized keys make it scale-invariant).
    d_heads = params["w_qk"].shape[1]
    w_cat = jnp.concatenate([params["w_qk"] * scale, params["w_v"]], axis=1)
    proj = x @ w_cat                                   # (B, n_fit, 2*H*dh)
    qk, v = proj[..., :d_heads], proj[..., d_heads:]

    qk_h = qk.reshape(B, n_fit, H, dh).transpose(0, 2, 1, 3)   # (B, H, n_fit, dh)
    v_h = v.reshape(B, n_fit, H, dh).transpose(0, 2, 1, 3)

    attn_out = shared_qk_attention(qk_h, v_h, causal=causal)   # (B, n_fit, H*dh) bf16
    attn_out = attn_out[:, :N, :].astype(params["w_out"].dtype)

    out = attn_out @ params["w_out"] + params["b_out"]         # (B, N, C)
    return out, None


def _reference_forward(x, params, *, n_heads, bucket_size, causal):
    """Pure-JAX f32 reference of the same shared-QK attention (FullQKAttention path)."""
    B, N, C = x.shape
    H = n_heads
    dh = C // H
    n_fit = _round_up(N, 2 * bucket_size)
    xp = jnp.pad(x, ((0, 0), (0, n_fit - N), (0, 0))) if n_fit != N else x
    qk = xp @ params["w_qk"]
    v = xp @ params["w_v"]
    qk_h = qk.reshape(B, n_fit, H, dh).transpose(0, 2, 1, 3)
    v_h = v.reshape(B, n_fit, H, dh).transpose(0, 2, 1, 3)
    k_h = qk_h / jnp.maximum(
        jnp.sqrt(jnp.sum(qk_h * qk_h, axis=-1, keepdims=True)), 1e-12)
    dots = jnp.einsum('bhie,bhje->bhij', qk_h, k_h) * (dh ** -0.5)
    idx = jnp.arange(n_fit)
    dots = jnp.where(idx[:, None] == idx[None, :], TOKEN_SELF_ATTN_VALUE, dots)
    if causal:
        dots = jnp.where(idx[None, :] > idx[:, None], MASK_VALUE, dots)
    a = jax.nn.softmax(dots, axis=-1)
    o = jnp.einsum('bhij,bhjd->bhid', a, v_h)
    o = o.transpose(0, 2, 1, 3).reshape(B, n_fit, H * dh)
    return o[:, :N, :] @ params["w_out"] + params["b_out"]


if __name__ == "__main__":
    B, N, d_model, n_heads, bucket_size = 2, 12, 32, 4, 4

    key = jax.random.PRNGKey(0)
    kx, kqk, kv_, ko, kb = jax.random.split(key, 5)
    x = jax.random.normal(kx, (B, N, d_model), dtype=jnp.float32)

    dim_heads = (d_model // n_heads) * n_heads
    params = {
        "w_qk": 0.1 * jax.random.normal(kqk, (d_model, dim_heads), jnp.float32),
        "w_v": 0.1 * jax.random.normal(kv_, (d_model, dim_heads), jnp.float32),
        "w_out": 0.1 * jax.random.normal(ko, (dim_heads, d_model), jnp.float32),
        "b_out": 0.01 * jax.random.normal(kb, (d_model,), jnp.float32),
    }

    for causal in (False, True):
        out, attn = reformer_layer_forward(
            x, x, x, None, None, None, params,
            n_heads=n_heads, bucket_size=bucket_size, causal=causal)
        out = jax.block_until_ready(out)

        assert out.shape == (B, N, d_model)
        assert attn is None

        ref = _reference_forward(x, params, n_heads=n_heads,
                                 bucket_size=bucket_size, causal=causal)
        max_err = float(jnp.max(jnp.abs(out - ref)))
        # bf16 matmul inputs + approx reciprocal -> compare against the f32 reference
        # with a bf16-appropriate tolerance.
        assert jnp.allclose(out, ref, atol=2e-2, rtol=2e-2), (
            f"causal={causal} mismatch vs reference: {max_err}")

    print("KERNEL_OK")
</pallas_src>

<mosaic_0001>
module attributes {stable_mosaic.version = 11 : i64} {
  func.func @_shared_qk_flash_kernel(%arg0: i32, %arg1: i32, %arg2: i32, %arg3: memref<1x4x16x8xbf16, #tpu.memory_space<vmem>>, %arg4: memref<1x4x16x8xbf16, #tpu.memory_space<vmem>>, %arg5: memref<1x4x16x8xbf16, #tpu.memory_space<vmem>>, %arg6: memref<1x16x32xbf16, #tpu.memory_space<vmem>>, %arg7: memref<4x16x1xf32, #tpu.memory_space<vmem>>, %arg8: memref<4x16x1xf32, #tpu.memory_space<vmem>>, %arg9: memref<4x16x8xf32, #tpu.memory_space<vmem>>) attributes {dimension_semantics = [#tpu.dimension_semantics<parallel>, #tpu.dimension_semantics<parallel>, #tpu.dimension_semantics<arbitrary>], iteration_bounds = array<i64: 2, 1, 1>, scalar_prefetch = 0 : i64, scratch_operands = 3 : i64, tpu.core_type = #tpu.core_type<tc>, window_params = [{transform_indices = @transform_0, window_bounds = array<i64: 1, 4, 16, 8>}, {transform_indices = @transform_1, window_bounds = array<i64: 1, 4, 16, 8>}, {transform_indices = @transform_2, window_bounds = array<i64: 1, 4, 16, 8>}, {transform_indices = @transform_3, window_bounds = array<i64: 1, 16, 32>}]} {
    %c0_i32 = arith.constant 0 : i32
    %0 = arith.cmpi eq, %arg2, %c0_i32 : i32
    %1 = arith.extui %0 : i1 to i32
    %c0_i32_0 = arith.constant 0 : i32
    %2 = arith.cmpi ne, %1, %c0_i32_0 : i32
    scf.if %2 {
      %cst = arith.constant 0xFF800000 : f32
      %18 = vector.broadcast %cst : f32 to vector<4x16x1xf32>
      %c0 = arith.constant 0 : index
      %c0_7 = arith.constant 0 : index
      %c0_8 = arith.constant 0 : index
      %19 = vector.load %arg7[%c0, %c0_7, %c0_8] : memref<4x16x1xf32, #tpu.memory_space<vmem>>, vector<4x16x1xf32>
      tpu.vector_store %arg7[%c0, %c0_7, %c0_8], %18 {strides = array<i32>} : memref<4x16x1xf32, #tpu.memory_space<vmem>>, vector<4x16x1xf32>,
      %cst_9 = arith.constant 0.000000e+00 : f32
      %20 = vector.broadcast %cst_9 : f32 to vector<4x16x1xf32>
      %c0_10 = arith.constant 0 : index
      %c0_11 = arith.constant 0 : index
      %c0_12 = arith.constant 0 : index
      %21 = vector.load %arg8[%c0_10, %c0_11, %c0_12] : memref<4x16x1xf32, #tpu.memory_space<vmem>>, vector<4x16x1xf32>
      tpu.vector_store %arg8[%c0_10, %c0_11, %c0_12], %20 {strides = array<i32>} : memref<4x16x1xf32, #tpu.memory_space<vmem>>, vector<4x16x1xf32>,
      %cst_13 = arith.constant 0.000000e+00 : f32
      %22 = vector.broadcast %cst_13 : f32 to vector<4x16x8xf32>
      %c0_14 = arith.constant 0 : index
      %c0_15 = arith.constant 0 : index
      %c0_16 = arith.constant 0 : index
      %23 = vector.load %arg9[%c0_14, %c0_15, %c0_16] : memref<4x16x8xf32, #tpu.memory_space<vmem>>, vector<4x16x8xf32>
      tpu.vector_store %arg9[%c0_14, %c0_15, %c0_16], %22 {strides = array<i32>} : memref<4x16x8xf32, #tpu.memory_space<vmem>>, vector<4x16x8xf32>,
    } else {
    }
    %c16_i32 = arith.constant 16 : i32
    %3 = arith.muli %arg1, %c16_i32 : i32
    %c16_i32_1 = arith.constant 16 : i32
    %4 = arith.muli %arg2, %c16_i32_1 : i32
    %c15_i32 = arith.constant 15 : i32
    %5 = arith.addi %3, %c15_i32 : i32
    %6 = arith.cmpi sle, %4, %5 : i32
    %c15_i32_2 = arith.constant 15 : i32
    %7 = arith.addi %4, %c15_i32_2 : i32
    %8 = arith.cmpi sle, %3, %7 : i32
    %9 = arith.andi %6, %8 : i1
    %true = arith.constant true
    %10 = arith.xori %9, %true : i1
    %11 = arith.extui %9 : i1 to i32
    %c0_i32_3 = arith.constant 0 : i32
    %12 = arith.cmpi ne, %11, %c0_i32_3 : i32
    scf.if %12 {
      %c0 = arith.constant 0 : index
      %c0_7 = arith.constant 0 : index
      %c0_8 = arith.constant 0 : index
      %c0_9 = arith.constant 0 : index
      %18 = vector.load %arg3[%c0, %c0_7, %c0_8, %c0_9] : memref<1x4x16x8xbf16, #tpu.memory_space<vmem>>, vector<1x4x16x8xbf16>
      %19 = vector.shape_cast %18 : vector<1x4x16x8xbf16> to vector<4x16x8xbf16>
      %c0_10 = arith.constant 0 : index
      %c0_11 = arith.constant 0 : index
      %c0_12 = arith.constant 0 : index
      %c0_13 = arith.constant 0 : index
      %20 = vector.load %arg4[%c0_10, %c0_11, %c0_12, %c0_13] : memref<1x4x16x8xbf16, #tpu.memory_space<vmem>>, vector<1x4x16x8xbf16>
      %21 = vector.shape_cast %20 : vector<1x4x16x8xbf16> to vector<4x16x8xbf16>
      %22 = arith.extf %21 : vector<4x16x8xbf16> to vector<4x16x8xf32>
      %23 = arith.mulf %22, %22 : vector<4x16x8xf32>
      %cst = arith.constant dense<0.000000e+00> : vector<4x16xf32>
      %24 = vector.multi_reduction <add>, %23, %cst [2] : vector<4x16x8xf32> to vector<4x16xf32>
      %25 = vector.shape_cast %24 : vector<4x16xf32> to vector<4x16x1xf32>
      %cst_14 = arith.constant 1.000000e-24 : f32
      %26 = vector.broadcast %cst_14 : f32 to vector<4x16x1xf32>
      %27 = arith.maximumf %25, %26 : vector<4x16x1xf32>
      %28 = math.rsqrt %27 : vector<4x16x1xf32>
      %29 = vector.broadcast %28 : vector<4x16x1xf32> to vector<4x16x8xf32>
      %30 = arith.mulf %22, %29 : vector<4x16x8xf32>
      %31 = arith.truncf %30 : vector<4x16x8xf32> to vector<4x16x8xbf16>
      %c0_15 = arith.constant 0 : index
      %c0_16 = arith.constant 0 : index
      %c0_17 = arith.constant 0 : index
      %c0_18 = arith.constant 0 : index
      %32 = vector.load %arg5[%c0_15, %c0_16, %c0_17, %c0_18] : memref<1x4x16x8xbf16, #tpu.memory_space<vmem>>, vector<1x4x16x8xbf16>
      %33 = vector.shape_cast %32 : vector<1x4x16x8xbf16> to vector<4x16x8xbf16>
      %cst_19 = arith.constant dense<0.000000e+00> : vector<4x16x16xf32>
      %34 = tpu.matmul %19, %31, %cst_19 {dimension_numbers = #tpu.dot_dimension_numbers<[2], [2], [1], [1], [0, 0, 0, 1, 1, 1], [0], [0]>} : vector<4x16x8xbf16>, vector<4x16x8xbf16>, vector<4x16x16xf32> -> vector<4x16x16xf32>
      %35 = tpu.iota {dimensions = array<i32: 1>} : vector<16x16xi32>
      %36 = vector.broadcast %4 : i32 to vector<16x16xi32>
      %37 = arith.addi %36, %35 : vector<16x16xi32>
      %38 = tpu.iota {dimensions = array<i32: 0>} : vector<16x16xi32>
      %39 = vector.broadcast %3 : i32 to vector<16x16xi32>
      %40 = arith.addi %39, %38 : vector<16x16xi32>
      %41 = arith.cmpi eq, %37, %40 : vector<16x16xi32>
      %42 = vector.shape_cast %41 : vector<16x16xi1> to vector<1x16x16xi1>
      %cst_20 = arith.constant -5.000000e+04 : f32
      %43 = vector.shape_cast %42 : vector<1x16x16xi1> to vector<1x16x16xi1>
      %44 = vector.broadcast %43 : vector<1x16x16xi1> to vector<4x16x16xi1>
      %45 = vector.broadcast %cst_20 : f32 to vector<4x16x16xf32>
      %46 = arith.select %44, %45, %34 : vector<4x16x16xi1>, vector<4x16x16xf32>
      %c0_21 = arith.constant 0 : index
      %c0_22 = arith.constant 0 : index
      %c0_23 = arith.constant 0 : index
      %47 = vector.load %arg7[%c0_21, %c0_22, %c0_23] : memref<4x16x1xf32, #tpu.memory_space<vmem>>, vector<4x16x1xf32>
      %cst_24 = arith.constant dense<0xFF800000> : vector<4x16xf32>
      %48 = vector.multi_reduction <maximumf>, %46, %cst_24 [2] : vector<4x16x16xf32> to vector<4x16xf32>
      %49 = vector.shape_cast %48 : vector<4x16xf32> to vector<4x16x1xf32>
      %50 = arith.maximumf %47, %49 : vector<4x16x1xf32>
      %51 = arith.subf %47, %50 : vector<4x16x1xf32>
      %52 = math.exp %51 : vector<4x16x1xf32>
      %53 = vector.broadcast %50 : vector<4x16x1xf32> to vector<4x16x16xf32>
      %54 = arith.subf %46, %53 : vector<4x16x16xf32>
      %55 = math.exp %54 : vector<4x16x16xf32>
      %c0_25 = arith.constant 0 : index
      %c0_26 = arith.constant 0 : index
      %c0_27 = arith.constant 0 : index
      %56 = vector.load %arg8[%c0_25, %c0_26, %c0_27] : memref<4x16x1xf32, #tpu.memory_space<vmem>>, vector<4x16x1xf32>
      %57 = arith.mulf %52, %56 : vector<4x16x1xf32>
      %cst_28 = arith.constant dense<0.000000e+00> : vector<4x16xf32>
      %58 = vector.multi_reduction <add>, %55, %cst_28 [2] : vector<4x16x16xf32> to vector<4x16xf32>
      %59 = vector.shape_cast %58 : vector<4x16xf32> to vector<4x16x1xf32>
      %60 = arith.addf %57, %59 : vector<4x16x1xf32>
      %c0_29 = arith.constant 0 : index
      %c0_30 = arith.constant 0 : index
      %c0_31 = arith.constant 0 : index
      %61 = vector.load %arg8[%c0_29, %c0_30, %c0_31] : memref<4x16x1xf32, #tpu.memory_space<vmem>>, vector<4x16x1xf32>
      tpu.vector_store %arg8[%c0_29, %c0_30, %c0_31], %60 {strides = array<i32>} : memref<4x16x1xf32, #tpu.memory_space<vmem>>, vector<4x16x1xf32>,
      %c0_32 = arith.constant 0 : index
      %c0_33 = arith.constant 0 : index
      %c0_34 = arith.constant 0 : index
      %62 = vector.load %arg9[%c0_32, %c0_33, %c0_34] : memref<4x16x8xf32, #tpu.memory_space<vmem>>, vector<4x16x8xf32>
      %63 = vector.broadcast %52 : vector<4x16x1xf32> to vector<4x16x8xf32>
      %64 = arith.mulf %63, %62 : vector<4x16x8xf32>
      %65 = arith.truncf %55 : vector<4x16x16xf32> to vector<4x16x16xbf16>
      %cst_35 = arith.constant dense<0.000000e+00> : vector<4x16x8xf32>
      %66 = tpu.matmul %65, %33, %cst_35 {dimension_numbers = #tpu.dot_dimension_numbers<[2], [1], [1], [2], [0, 0, 0, 1, 1, 2], [0], [0]>} : vector<4x16x16xbf16>, vector<4x16x8xbf16>, vector<4x16x8xf32> -> vector<4x16x8xf32>
      %67 = arith.addf %64, %66 : vector<4x16x8xf32>
      %c0_36 = arith.constant 0 : index
      %c0_37 = arith.constant 0 : index
      %c0_38 = arith.constant 0 : index
      %68 = vector.load %arg9[%c0_36, %c0_37, %c0_38] : memref<4x16x8xf32, #tpu.memory_space<vmem>>, vector<4x16x8xf32>
      tpu.vector_store %arg9[%c0_36, %c0_37, %c0_38], %67 {strides = array<i32>} : memref<4x16x8xf32, #tpu.memory_space<vmem>>, vector<4x16x8xf32>,
      %c0_39 = arith.constant 0 : index
      %c0_40 = arith.constant 0 : index
      %c0_41 = arith.constant 0 : index
      %69 = vector.load %arg7[%c0_39, %c0_40, %c0_41] : memref<4x16x1xf32, #tpu.memory_space<vmem>>, vector<4x16x1xf32>
      tpu.vector_store %arg7[%c0_39, %c0_40, %c0_41], %50 {strides = array<i32>} : memref<4x16x1xf32, #tpu.memory_space<vmem>>, vector<4x16x1xf32>,
    } else {
    }
    %13 = arith.extui %10 : i1 to i32
    %c0_i32_4 = arith.constant 0 : i32
    %14 = arith.cmpi ne, %13, %c0_i32_4 : i32
    scf.if %14 {
      %c0 = arith.constant 0 : index
      %c0_7 = arith.constant 0 : index
      %c0_8 = arith.constant 0 : index
      %c0_9 = arith.constant 0 : index
      %18 = vector.load %arg3[%c0, %c0_7, %c0_8, %c0_9] : memref<1x4x16x8xbf16, #tpu.memory_space<vmem>>, vector<1x4x16x8xbf16>
      %19 = vector.shape_cast %18 : vector<1x4x16x8xbf16> to vector<4x16x8xbf16>
      %c0_10 = arith.constant 0 : index
      %c0_11 = arith.constant 0 : index
      %c0_12 = arith.constant 0 : index
      %c0_13 = arith.constant 0 : index
      %20 = vector.load %arg4[%c0_10, %c0_11, %c0_12, %c0_13] : memref<1x4x16x8xbf16, #tpu.memory_space<vmem>>, vector<1x4x16x8xbf16>
      %21 = vector.shape_cast %20 : vector<1x4x16x8xbf16> to vector<4x16x8xbf16>
      %22 = arith.extf %21 : vector<4x16x8xbf16> to vector<4x16x8xf32>
      %23 = arith.mulf %22, %22 : vector<4x16x8xf32>
      %cst = arith.constant dense<0.000000e+00> : vector<4x16xf32>
      %24 = vector.multi_reduction <add>, %23, %cst [2] : vector<4x16x8xf32> to vector<4x16xf32>
      %25 = vector.shape_cast %24 : vector<4x16xf32> to vector<4x16x1xf32>
      %cst_14 = arith.constant 1.000000e-24 : f32
      %26 = vector.broadcast %cst_14 : f32 to vector<4x16x1xf32>
      %27 = arith.maximumf %25, %26 : vector<4x16x1xf32>
      %28 = math.rsqrt %27 : vector<4x16x1xf32>
      %29 = vector.broadcast %28 : vector<4x16x1xf32> to vector<4x16x8xf32>
      %30 = arith.mulf %22, %29 : vector<4x16x8xf32>
      %31 = arith.truncf %30 : vector<4x16x8xf32> to vector<4x16x8xbf16>
      %c0_15 = arith.constant 0 : index
      %c0_16 = arith.constant 0 : index
      %c0_17 = arith.constant 0 : index
      %c0_18 = arith.constant 0 : index
      %32 = vector.load %arg5[%c0_15, %c0_16, %c0_17, %c0_18] : memref<1x4x16x8xbf16, #tpu.memory_space<vmem>>, vector<1x4x16x8xbf16>
      %33 = vector.shape_cast %32 : vector<1x4x16x8xbf16> to vector<4x16x8xbf16>
      %cst_19 = arith.constant dense<0.000000e+00> : vector<4x16x16xf32>
      %34 = tpu.matmul %19, %31, %cst_19 {dimension_numbers = #tpu.dot_dimension_numbers<[2], [2], [1], [1], [0, 0, 0, 1, 1, 1], [0], [0]>} : vector<4x16x8xbf16>, vector<4x16x8xbf16>, vector<4x16x16xf32> -> vector<4x16x16xf32>
      %c0_20 = arith.constant 0 : index
      %c0_21 = arith.constant 0 : index
      %c0_22 = arith.constant 0 : index
      %35 = vector.load %arg7[%c0_20, %c0_21, %c0_22] : memref<4x16x1xf32, #tpu.memory_space<vmem>>, vector<4x16x1xf32>
      %cst_23 = arith.constant dense<0xFF800000> : vector<4x16xf32>
      %36 = vector.multi_reduction <maximumf>, %34, %cst_23 [2] : vector<4x16x16xf32> to vector<4x16xf32>
      %37 = vector.shape_cast %36 : vector<4x16xf32> to vector<4x16x1xf32>
      %38 = arith.maximumf %35, %37 : vector<4x16x1xf32>
      %39 = arith.subf %35, %38 : vector<4x16x1xf32>
      %40 = math.exp %39 : vector<4x16x1xf32>
      %41 = vector.broadcast %38 : vector<4x16x1xf32> to vector<4x16x16xf32>
      %42 = arith.subf %34, %41 : vector<4x16x16xf32>
      %43 = math.exp %42 : vector<4x16x16xf32>
      %c0_24 = arith.constant 0 : index
      %c0_25 = arith.constant 0 : index
      %c0_26 = arith.constant 0 : index
      %44 = vector.load %arg8[%c0_24, %c0_25, %c0_26] : memref<4x16x1xf32, #tpu.memory_space<vmem>>, vector<4x16x1xf32>
      %45 = arith.mulf %40, %44 : vector<4x16x1xf32>
      %cst_27 = arith.constant dense<0.000000e+00> : vector<4x16xf32>
      %46 = vector.multi_reduction <add>, %43, %cst_27 [2] : vector<4x16x16xf32> to vector<4x16xf32>
      %47 = vector.shape_cast %46 : vector<4x16xf32> to vector<4x16x1xf32>
      %48 = arith.addf %45, %47 : vector<4x16x1xf32>
      %c0_28 = arith.constant 0 : index
      %c0_29 = arith.constant 0 : index
      %c0_30 = arith.constant 0 : index
      %49 = vector.load %arg8[%c0_28, %c0_29, %c0_30] : memref<4x16x1xf32, #tpu.memory_space<vmem>>, vector<4x16x1xf32>
      tpu.vector_store %arg8[%c0_28, %c0_29, %c0_30], %48 {strides = array<i32>} : memref<4x16x1xf32, #tpu.memory_space<vmem>>, vector<4x16x1xf32>,
      %c0_31 = arith.constant 0 : index
      %c0_32 = arith.constant 0 : index
      %c0_33 = arith.constant 0 : index
      %50 = vector.load %arg9[%c0_31, %c0_32, %c0_33] : memref<4x16x8xf32, #tpu.memory_space<vmem>>, vector<4x16x8xf32>
      %51 = vector.broadcast %40 : vector<4x16x1xf32> to vector<4x16x8xf32>
      %52 = arith.mulf %51, %50 : vector<4x16x8xf32>
      %53 = arith.truncf %43 : vector<4x16x16xf32> to vector<4x16x16xbf16>
      %cst_34 = arith.constant dense<0.000000e+00> : vector<4x16x8xf32>
      %54 = tpu.matmul %53, %33, %cst_34 {dimension_numbers = #tpu.dot_dimension_numbers<[2], [1], [1], [2], [0, 0, 0, 1, 1, 2], [0], [0]>} : vector<4x16x16xbf16>, vector<4x16x8xbf16>, vector<4x16x8xf32> -> vector<4x16x8xf32>
      %55 = arith.addf %52, %54 : vector<4x16x8xf32>
      %c0_35 = arith.constant 0 : index
      %c0_36 = arith.constant 0 : index
      %c0_37 = arith.constant 0 : index
      %56 = vector.load %arg9[%c0_35, %c0_36, %c0_37] : memref<4x16x8xf32, #tpu.memory_space<vmem>>, vector<4x16x8xf32>
      tpu.vector_store %arg9[%c0_35, %c0_36, %c0_37], %55 {strides = array<i32>} : memref<4x16x8xf32, #tpu.memory_space<vmem>>, vector<4x16x8xf32>,
      %c0_38 = arith.constant 0 : index
      %c0_39 = arith.constant 0 : index
      %c0_40 = arith.constant 0 : index
      %57 = vector.load %arg7[%c0_38, %c0_39, %c0_40] : memref<4x16x1xf32, #tpu.memory_space<vmem>>, vector<4x16x1xf32>
      tpu.vector_store %arg7[%c0_38, %c0_39, %c0_40], %38 {strides = array<i32>} : memref<4x16x1xf32, #tpu.memory_space<vmem>>, vector<4x16x1xf32>,
    } else {
    }
    %c0_i32_5 = arith.constant 0 : i32
    %15 = arith.cmpi eq, %arg2, %c0_i32_5 : i32
    %16 = arith.extui %15 : i1 to i32
    %c0_i32_6 = arith.constant 0 : i32
    %17 = arith.cmpi ne, %16, %c0_i32_6 : i32
    scf.if %17 {
      %c0 = arith.constant 0 : index
      %c0_7 = arith.constant 0 : index
      %c0_8 = arith.constant 0 : index
      %18 = vector.load %arg8[%c0, %c0_7, %c0_8] : memref<4x16x1xf32, #tpu.memory_space<vmem>>, vector<4x16x1xf32>
      %19 = tpu.reciprocal %18 {approx = true} : vector<4x16x1xf32> -> vector<4x16x1xf32>
      %c0_9 = arith.constant 0 : index
      %c0_10 = arith.constant 0 : index
      %c0_11 = arith.constant 0 : index
      %20 = vector.load %arg9[%c0_9, %c0_10, %c0_11] : memref<4x16x8xf32, #tpu.memory_space<vmem>>, vector<1x16x8xf32>
      %21 = vector.shape_cast %20 : vector<1x16x8xf32> to vector<16x8xf32>
      %22 = vector.extract_strided_slice %19 {offsets = [0, 0, 0], sizes = [1, 16, 1], strides = [1, 1, 1]} : vector<4x16x1xf32> to vector<1x16x1xf32>
      %23 = vector.shape_cast %22 : vector<1x16x1xf32> to vector<16x1xf32>
      %24 = vector.broadcast %23 : vector<16x1xf32> to vector<16x8xf32>
      %25 = arith.mulf %21, %24 : vector<16x8xf32>
      %26 = arith.truncf %25 : vector<16x8xf32> to vector<16x8xbf16>
      %c0_12 = arith.constant 0 : index
      %c0_13 = arith.constant 0 : index
      %c0_14 = arith.constant 0 : index
      %27 = vector.load %arg6[%c0_12, %c0_13, %c0_14] : memref<1x16x32xbf16, #tpu.memory_space<vmem>>, vector<1x16x8xbf16>
      %28 = vector.shape_cast %27 : vector<1x16x8xbf16> to vector<16x8xbf16>
      %29 = vector.shape_cast %26 : vector<16x8xbf16> to vector<1x16x8xbf16>
      tpu.vector_store %arg6[%c0_12, %c0_13, %c0_14], %29 {strides = array<i32>} : memref<1x16x32xbf16, #tpu.memory_space<vmem>>, vector<1x16x8xbf16>,
      %c1 = arith.constant 1 : index
      %c0_15 = arith.constant 0 : index
      %c0_16 = arith.constant 0 : index
      %30 = vector.load %arg9[%c1, %c0_15, %c0_16] : memref<4x16x8xf32, #tpu.memory_space<vmem>>, vector<1x16x8xf32>
      %31 = vector.shape_cast %30 : vector<1x16x8xf32> to vector<16x8xf32>
      %32 = vector.extract_strided_slice %19 {offsets = [1, 0, 0], sizes = [1, 16, 1], strides = [1, 1, 1]} : vector<4x16x1xf32> to vector<1x16x1xf32>
      %33 = vector.shape_cast %32 : vector<1x16x1xf32> to vector<16x1xf32>
      %34 = vector.broadcast %33 : vector<16x1xf32> to vector<16x8xf32>
      %35 = arith.mulf %31, %34 : vector<16x8xf32>
      %36 = arith.truncf %35 : vector<16x8xf32> to vector<16x8xbf16>
      %c0_17 = arith.constant 0 : index
      %c0_18 = arith.constant 0 : index
      %c8 = arith.constant 8 : index
      %37 = vector.load %arg6[%c0_17, %c0_18, %c8] : memref<1x16x32xbf16, #tpu.memory_space<vmem>>, vector<1x16x8xbf16>
      %38 = vector.shape_cast %37 : vector<1x16x8xbf16> to vector<16x8xbf16>
      %39 = vector.shape_cast %36 : vector<16x8xbf16> to vector<1x16x8xbf16>
      tpu.vector_store %arg6[%c0_17, %c0_18, %c8], %39 {strides = array<i32>} : memref<1x16x32xbf16, #tpu.memory_space<vmem>>, vector<1x16x8xbf16>,
      %c2 = arith.constant 2 : index
      %c0_19 = arith.constant 0 : index
      %c0_20 = arith.constant 0 : index
      %40 = vector.load %arg9[%c2, %c0_19, %c0_20] : memref<4x16x8xf32, #tpu.memory_space<vmem>>, vector<1x16x8xf32>
      %41 = vector.shape_cast %40 : vector<1x16x8xf32> to vector<16x8xf32>
      %42 = vector.extract_strided_slice %19 {offsets = [2, 0, 0], sizes = [1, 16, 1], strides = [1, 1, 1]} : vector<4x16x1xf32> to vector<1x16x1xf32>
      %43 = vector.shape_cast %42 : vector<1x16x1xf32> to vector<16x1xf32>
      %44 = vector.broadcast %43 : vector<16x1xf32> to vector<16x8xf32>
      %45 = arith.mulf %41, %44 : vector<16x8xf32>
      %46 = arith.truncf %45 : vector<16x8xf32> to vector<16x8xbf16>
      %c0_21 = arith.constant 0 : index
      %c0_22 = arith.constant 0 : index
      %c16 = arith.constant 16 : index
      %47 = vector.load %arg6[%c0_21, %c0_22, %c16] : memref<1x16x32xbf16, #tpu.memory_space<vmem>>, vector<1x16x8xbf16>
      %48 = vector.shape_cast %47 : vector<1x16x8xbf16> to vector<16x8xbf16>
      %49 = vector.shape_cast %46 : vector<16x8xbf16> to vector<1x16x8xbf16>
      tpu.vector_store %arg6[%c0_21, %c0_22, %c16], %49 {strides = array<i32>} : memref<1x16x32xbf16, #tpu.memory_space<vmem>>, vector<1x16x8xbf16>,
      %c3 = arith.constant 3 : index
      %c0_23 = arith.constant 0 : index
      %c0_24 = arith.constant 0 : index
      %50 = vector.load %arg9[%c3, %c0_23, %c0_24] : memref<4x16x8xf32, #tpu.memory_space<vmem>>, vector<1x16x8xf32>
      %51 = vector.shape_cast %50 : vector<1x16x8xf32> to vector<16x8xf32>
      %52 = vector.extract_strided_slice %19 {offsets = [3, 0, 0], sizes = [1, 16, 1], strides = [1, 1, 1]} : vector<4x16x1xf32> to vector<1x16x1xf32>
      %53 = vector.shape_cast %52 : vector<1x16x1xf32> to vector<16x1xf32>
      %54 = vector.broadcast %53 : vector<16x1xf32> to vector<16x8xf32>
      %55 = arith.mulf %51, %54 : vector<16x8xf32>
      %56 = arith.truncf %55 : vector<16x8xf32> to vector<16x8xbf16>
      %c0_25 = arith.constant 0 : index
      %c0_26 = arith.constant 0 : index
      %c24 = arith.constant 24 : index
      %57 = vector.load %arg6[%c0_25, %c0_26, %c24] : memref<1x16x32xbf16, #tpu.memory_space<vmem>>, vector<1x16x8xbf16>
      %58 = vector.shape_cast %57 : vector<1x16x8xbf16> to vector<16x8xbf16>
      %59 = vector.shape_cast %56 : vector<16x8xbf16> to vector<1x16x8xbf16>
      tpu.vector_store %arg6[%c0_25, %c0_26, %c24], %59 {strides = array<i32>} : memref<1x16x32xbf16, #tpu.memory_space<vmem>>, vector<1x16x8xbf16>,
    } else {
    }
    return
  }
  func.func @transform_0(%arg0: i32, %arg1: i32, %arg2: i32) -> (i32, i32, i32, i32) {
    %c0_i32 = arith.constant 0 : i32
    %c0_i32_0 = arith.constant 0 : i32
    %c0_i32_1 = arith.constant 0 : i32
    return %arg0, %c0_i32, %arg1, %c0_i32_0 : i32, i32, i32, i32
  }
  func.func @transform_1(%arg0: i32, %arg1: i32, %arg2: i32) -> (i32, i32, i32, i32) {
    %c0_i32 = arith.constant 0 : i32
    %c0_i32_0 = arith.constant 0 : i32
    %c0_i32_1 = arith.constant 0 : i32
    return %arg0, %c0_i32, %arg2, %c0_i32_0 : i32, i32, i32, i32
  }
  func.func @transform_2(%arg0: i32, %arg1: i32, %arg2: i32) -> (i32, i32, i32, i32) {
    %c0_i32 = arith.constant 0 : i32
    %c0_i32_0 = arith.constant 0 : i32
    %c0_i32_1 = arith.constant 0 : i32
    return %arg0, %c0_i32, %arg2, %c0_i32_0 : i32, i32, i32, i32
  }
  func.func @transform_3(%arg0: i32, %arg1: i32, %arg2: i32) -> (i32, i32, i32) {
    %c0_i32 = arith.constant 0 : i32
    %c0_i32_0 = arith.constant 0 : i32
    return %arg0, %arg1, %c0_i32 : i32, i32, i32
  }
}

</mosaic_0001>

<bundles_post_ra>
// kernel: tpu_custom_call.1
= control target key start
LH: loop header
LB: loop body
LE: loop exit
PB: predicated region body
PF: predicated region fallthrough
CT: control target
= control target key end

     0   :  { %8 = vsyncpa [#allocation6], 0  ;;  %s3000_s0 = inlined_call_operand.vmem [shape: bf16[2,4,16,8], index: 0, kind: input, shape index: {}]   ;;  %s3001_s1 = inlined_call_operand.vmem [shape: bf16[2,4,16,8], index: 1, kind: input, shape index: {}]   ;;  %s3002_s2 = inlined_call_operand.vmem [shape: bf16[2,4,16,8], index: 2, kind: input, shape index: {}]   ;;  %s3003_s3 = inlined_call_operand.hbm [shape: bf16[2,16,32], index: 3, kind: output, shape index: {}]  }
   0x1   :  { %10 = vsyncpa [#allocation6 + $0x1], 0  ;;  %s2557_s12 = smov 0   ;;  %s2559_s13 = smov 0  }
   0x2   :  { %s2561_s14 = smov 0   ;;  %s2563_s15 = smov 0  }
   0x3   :  { %s2565_s16 = smov 0   ;;  %s2567_s17 = smov 0  }
   0x4 LB: > { %s2157_s18 = sadd.s32 4294967295, %s2525_s17   ;;  %s2158_s19 = sadd.s32 4294967294, %s2525_s17   ;;  %s2525_s17 = sphi %s2567_s17, %s16_s17   ;;  %s2521_s16 = sphi %s2565_s16, %s3010_s16   ;;  %s2517_s15 = sphi %s2563_s15, %s3009_s15   ;;  %s2513_s14 = sphi %s2561_s14, %s3008_s14   ;;  %s2509_s13 = sphi %s2559_s13, %s3007_s13   ;;  %s2505_s12 = sphi %s2557_s12, %s3006_s12  }
   0x5   : > { %s35_s20 = sadd.s32 1, %s2521_s16  ;;  %s128_s21 = sadd.s32 1, %s2513_s14 }
   0x6   : > { %p37_p0 = scmp.ge.s32.totalorder %s35_s20, 2  ;;  %p138_p1 = scmp.ne.s32.totalorder %s2513_s14, %s2509_s13 }
   0x7   : > { %p139_p2 = scmp.eq.s32.totalorder %s2157_s18, 1  ;;  %p144_p3 = scmp.ne.s32.totalorder %s2509_s13, %s2505_s12 }
   0x8   : > { %s3012_s20 = smov (%p37_p0, %s35_s20), 0  ;;  %p145_p5 = scmp.eq.s32.totalorder %s2158_s19, 1 }
   0x9   : > { %p2597_p4 = por %p139_p2, %p138_p1  ;;  %s123_s23 = ssub.s32 %s2521_s16, %s3012_s20 }
   0xa   : > { %p2161_p6 = scmp.ge.s32.totalorder %s2525_s17, 1  ;;  %p126_p7 = scmp.eq.s32.totalorder %s123_s23, 0 }
   0xb   : > { %p2604_p8 = por %p145_p5, %p144_p3  ;;  %p202_p9 = scmp.lt.s32.totalorder %s2525_s17, 3 }
   0xc   : > { %s2610_s25 = scalar_select %p126_p7, %s2513_s14, %s128_s21  }
   0xd   : > { %p203_p10 = pnand %p2161_p6, %p202_p9 }
   0xe   : > { %p249_p11 = scmp.lt.s32.totalorder (!%p203_p10), %s2517_s15, 1  ;;  %vm301_vm0 = vcmask (!%p203_p10), 64512   ;;  %v2527_v28 = vmov (!%p203_p10), 0.0   ;;  %vm2528_vm1 = vmmov (!%p203_p10), 0   ;;  %vm284_vm2 = vcmask (!%p203_p10), 7168   ;;  %s2531_s10 = smov (!%p203_p10), 8  }
   0xf   : > { %206 = sbr.rel (%p203_p10) target bundleno = 1159 (0x487), region = 32  ;;  %2261 = vmatprep.subr.bf16.mxu0 (!%p203_p10), %v2527_v28  ;;  %302 = vst.msk [vmem:[#allocation4] sm:$0xff] (!%p203_p10), %vm301_vm0, %v2527_v28  ;;  %303 = vst.msk [vmem:[#allocation4 + $0x8] sm:$0xff] (!%p203_p10), %vm301_vm0, %v2527_v28  ;;  %2267 = vmatprep.subr.bf16.mxu1 (!%p203_p10), %v2527_v28  ;;  %vm653_vm4 = vcmask (!%p203_p10), 130048   ;;  %s2532_s11 = smov (!%p203_p10), 16   ;;  %vm1930_vm6 = vcmask (!%p203_p10), 60416  }
  0x10   : > { %304 = vst.msk [vmem:[#allocation4 + $0x10] sm:$0xff] (!%p203_p10), %vm301_vm0, %v2527_v28  ;;  %305 = vst.msk [vmem:[#allocation4 + $0x18] sm:$0xff] (!%p203_p10), %vm301_vm0, %v2527_v28  ;;  %2263 = vmatprep.mubr.msk.bf16.mxu0 (!%p203_p10), %vm2528_vm1, %v2527_v28  ;;  %2269 = vmatprep.mubr.msk.bf16.mxu1 (!%p203_p10), %vm2528_vm1, %v2527_v28  ;;  %s2533_s18 = smov (!%p203_p10), 24   ;;  %s245_s19 = sand.u32 (!%p203_p10), 1, %s2509_s13   ;;  %vm1960_vm7 = vcmask (!%p203_p10), 126016   ;;  %vm1990_vm8 = vcmask (!%p203_p10), 191616  }
  0x11   : > { %306 = vst.msk [vmem:[#allocation4 + $0x20] sm:$0xff] (!%p203_p10), %vm301_vm0, %v2527_v28  ;;  %307 = vst.msk [vmem:[#allocation4 + $0x28] sm:$0xff] (!%p203_p10), %vm301_vm0, %v2527_v28  ;;  %s2162_s21 = sshll.u32 (!%p203_p10), %s245_s19, 3  ;;  %vm2020_vm9 = vcmask (!%p203_p10), 257216   ;;  %s2954_s4 = scalar_lea.sflag (!%p203_p10), [#allocation6], %s245_s19 }
  0x12   : > { %308 = vst.msk [vmem:[#allocation4 + $0x30] sm:$0xff] (!%p203_p10), %vm301_vm0, %v2527_v28  ;;  %309 = vst.msk [vmem:[#allocation4 + $0x38] sm:$0xff] (!%p203_p10), %vm301_vm0, %v2527_v28  ;;  %s247_s23 = scalar_lea.vmem (!%p203_p10), [#allocation5], %s2162_s21 }
  0x13   : > { %293 = vst.msk [vmem:[#allocation3] sm:$0xff] (!%p203_p10), %vm284_vm2, %v2527_v28  ;;  %294 = vst.msk [vmem:[#allocation3 + $0x8] sm:$0xff] (!%p203_p10), %vm284_vm2, %v2527_v28 }
  0x14   : > { %295 = vst.msk [vmem:[#allocation3 + $0x10] sm:$0xff] (!%p203_p10), %vm284_vm2, %v2527_v28  ;;  %296 = vst.msk [vmem:[#allocation3 + $0x18] sm:$0xff] (!%p203_p10), %vm284_vm2, %v2527_v28 }
  0x15   : > { %297 = vst.msk [vmem:[#allocation3 + $0x20] sm:$0xff] (!%p203_p10), %vm284_vm2, %v2527_v28  ;;  %298 = vst.msk [vmem:[#allocation3 + $0x28] sm:$0xff] (!%p203_p10), %vm284_vm2, %v2527_v28 }
  0x16   : > { %s250_s26 = scalar_select %p249_p11, %s2517_s15, 1  ;;  %299 = vst.msk [vmem:[#allocation3 + $0x30] sm:$0xff] %vm284_vm2, %v2527_v28  ;;  %300 = vst.msk [vmem:[#allocation3 + $0x38] sm:$0xff] %vm284_vm2, %v2527_v28 }
  0x18   : > { %s2214_s27 = sshll.u32 %s250_s26, 5  ;;  %s2225_s26 = sshll.u32 %s2517_s15, 7 }
  0x19   : > { %s266_s30 = scalar_lea.vmem %s3001_s1, %s2214_s27  ;;  %s2620_s6 = scalar_lea.vmem %s3000_s0, %s2214_s27 }
  0x1a   : > { %v2242_v0 = vld [vmem:[%s266_s30 + $0x8] sm:$0xff]   ;;  %v2227_v1 = vld [vmem:[%s266_s30] sm:$0xff]   ;;  %v2243_v2 = vld [vmem:[%s266_s30 + $0x10] sm:$0xff]   ;;  %s2637_s9 = scalar_lea.vmem %s3002_s2, %s2214_s27  ;;  %s2039_s27 = sshll.u32 %s247_s23, 4  ;;  %s2950_s27 = int_to_ptr.vmem [resolvable:$true] %s2039_s27 }
  0x1b   : > { %v2622_v3 = vunpack.c.l.bf16 %v2242_v0  ;;  %v2624_v4 = vunpack.c.l.bf16 %v2227_v1  ;;  %v2626_v5 = vunpack.c.h.bf16 %v2242_v0  ;;  %v2628_v6 = vunpack.c.h.bf16 %v2227_v1  ;;  %v2244_v9 = vld [vmem:[%s266_s30 + $0x18] sm:$0xff]   ;;  %v2376_v0 = vld [vmem:[%s2620_s6 + $0x8] sm:$0xff]   ;;  %s2948_s30 = scalar_lea.hbm %s3003_s3, %s2225_s26  ;;  %s2447_s5 = scalar_lea.vmem %s2950_s27, 128 }
  0x1c   : > { %v2630_v7 = vunpack.c.h.bf16 %v2243_v2  ;;  %v2632_v8 = vunpack.c.l.bf16 %v2243_v2  ;;  %v2655_v20 = vunpack.c.h.bf16 %v2244_v9  ;;  %v2657_v21 = vunpack.c.l.bf16 %v2244_v9  ;;  %v2375_v2 = vld [vmem:[%s2620_s6] sm:$0xff]   ;;  %p2448_p12 = scmp.ne.s32.totalorder %s2950_s27, %s2447_s5  ;;  %s2534_s15 = smov [#allocation5]  }
  0x1d   : > { %v346_v10 = vmul.f32 %v2622_v3, %v2622_v3  ;;  %v344_v11 = vmul.f32 %v2624_v4, %v2624_v4  ;;  %v347_v12 = vmul.f32 %v2626_v5, %v2626_v5  ;;  %v345_v13 = vmul.f32 %v2628_v6, %v2628_v6 }
  0x1e   : > { %v349_v18 = vmul.f32 %v2630_v7, %v2630_v7  ;;  %v348_v19 = vmul.f32 %v2632_v8, %v2632_v8  ;;  %v351_v24 = vmul.f32 %v2655_v20, %v2655_v20  ;;  %v350_v25 = vmul.f32 %v2657_v21, %v2657_v21  ;;  %p2449_p13 = pnand %p2448_p12, %p2597_p4 }
  0x1f   : > { %v359_v14 = vsel %vm301_vm0, %v346_v10, 0.0  ;;  %v353_v15 = vsel %vm301_vm0, %v344_v11, 0.0  ;;  %v362_v16 = vsel %vm301_vm0, %v347_v12, 0.0  ;;  %v356_v17 = vsel %vm301_vm0, %v345_v13, 0.0 }
  0x20   : > { %360 = vadd.xlane.f32.xlu1 %v359_v14  ;;  %354 = vadd.xlane.f32.xlu0 %v353_v15  ;;  %v368_v22 = vsel %vm301_vm0, %v349_v18, 0.0  ;;  %v365_v23 = vsel %vm301_vm0, %v348_v19, 0.0  ;;  %v374_v26 = vsel %vm301_vm0, %v351_v24, 0.0  ;;  %v371_v27 = vsel %vm301_vm0, %v350_v25, 0.0  ;;  %p2450_p0 = pneg %p2449_p13 }
  0x21   : > { %v2529_v9 = vmov -inf   ;;  %v621_v10 = vlaneseq }
  0x22   : > { %285 = vst.msk [vmem:[#allocation2] sm:$0xff] %vm284_vm2, %v2529_v9  ;;  %286 = vst.msk [vmem:[#allocation2 + $0x8] sm:$0xff] %vm284_vm2, %v2529_v9 }
  0x23   : > { %287 = vst.msk [vmem:[#allocation2 + $0x10] sm:$0xff] %vm284_vm2, %v2529_v9  ;;  %288 = vst.msk [vmem:[#allocation2 + $0x18] sm:$0xff] %vm284_vm2, %v2529_v9  ;;  %v626_v11 = vshrl.u32 %v621_v10, 7  ;;  %v622_v12 = vand.u32 127, %v621_v10 }
  0x24   : > { %363 = vadd.xlane.f32.xlu1 %v362_v16  ;;  %357 = vadd.xlane.f32.xlu0 %v356_v17  ;;  %289 = vst.msk [vmem:[#allocation2 + $0x20] sm:$0xff] %vm284_vm2, %v2529_v9  ;;  %290 = vst.msk [vmem:[#allocation2 + $0x28] sm:$0xff] %vm284_vm2, %v2529_v9 }
  0x25   : > { %291 = vst.msk [vmem:[#allocation2 + $0x30] sm:$0xff] %vm284_vm2, %v2529_v9  ;;  %292 = vst.msk [vmem:[#allocation2 + $0x38] sm:$0xff] %vm284_vm2, %v2529_v9  ;;  %v627_v13 = vadd.s32 8, %v626_v11  ;;  %vm631_vm3 = vcmp.eq.s32.totalorder %v622_v12, %v626_v11 }
  0x27   : > { %vm632_vm5 = vcmp.eq.s32.totalorder %v622_v12, %v627_v13 }
  0x28   : > { %369 = vadd.xlane.f32.xlu1 %v368_v22  ;;  %366 = vadd.xlane.f32.xlu0 %v365_v23 }
  0x2c   : > { %375 = vadd.xlane.f32.xlu1 %v374_v26  ;;  %372 = vadd.xlane.f32.xlu0 %v371_v27  ;;  %v2840_v9 = vld [vmem:[#allocation2 + $0x38] sm:$0xff] }
  0xad   : > { %v361_v29 = vpop.xlane.xlu1 %360  ;;  %v355_v30 = vpop.xlane.xlu0 %354 }
  0xae   : > { %v379_v31 = vmax.f32 %v361_v29, 1e-24  ;;  %v377_v32 = vmax.f32 %v355_v30, 1e-24 }
  0xb0   : > { %2383 = vrsqrt.f32 %v379_v31 }
  0xb1   : > { %v364_v33 = vpop.xlane.xlu1 %363  ;;  %v358_v34 = vpop.xlane.xlu0 %357  ;;  %2385 = vrsqrt.f32 %v377_v32 }
  0xb2   : > { %v380_v35 = vmax.f32 %v364_v33, 1e-24  ;;  %v378_v36 = vmax.f32 %v358_v34, 1e-24 }
  0xb4   : > { %2387 = vrsqrt.f32 %v380_v35 }
  0xb5   : > { %2389 = vrsqrt.f32 %v378_v36  ;;  %v370_v37 = vpop.xlane.xlu1 %369  ;;  %v367_v38 = vpop.xlane.xlu0 %366 }
  0xb6   : > { %v382_v39 = vmax.f32 %v370_v37, 1e-24  ;;  %v381_v40 = vmax.f32 %v367_v38, 1e-24 }
  0xb8   : > { %2391 = vrsqrt.f32 %v382_v39 }
  0xb9   : > { %2393 = vrsqrt.f32 %v381_v40  ;;  %v376_v41 = vpop.xlane.xlu1 %375  ;;  %v373_v42 = vpop.xlane.xlu0 %372 }
  0xba   : > { %v2384_v43 = vpop.eup %2383  ;;  %v384_v44 = vmax.f32 %v376_v41, 1e-24  ;;  %v383_v45 = vmax.f32 %v373_v42, 1e-24 }
  0xbb   : > { %v2386_v46 = vpop.eup %2385  ;;  %v395_v47 = vmul.f32 %v2384_v43, %v2622_v3 }
  0xbc   : > { %2395 = vrsqrt.f32 %v384_v44  ;;  %v393_v51 = vmul.f32 %v2386_v46, %v2624_v4 }
  0xbd   : > { %2397 = vrsqrt.f32 %v383_v45 }
  0xbe   : > { %v2388_v48 = vpop.eup %2387 }
  0xbf   : > { %v2390_v49 = vpop.eup %2389  ;;  %v396_v50 = vmul.f32 %v2388_v48, %v2626_v5  ;;  %v2785_v48 = vld [vmem:[#allocation2] sm:$0xff] }
  0xc0   : > { %v394_v52 = vmul.f32 %v2390_v49, %v2628_v6 }
  0xc1   : > { %v402_v53 = vpack.c.bf16 %v396_v50, %v395_v47  ;;  %v2530_v47 = vmov 0   ;;  %v2787_v50 = vld [vmem:[#allocation2 + $0x8] sm:$0xff] }
  0xc2   : > { %v2392_v54 = vpop.eup %2391  ;;  %v401_v55 = vpack.c.bf16 %v394_v52, %v393_v51  ;;  %2373 = vset.pattern.permute.xlu0 %v2530_v47  ;;  %2374 = vset.pattern.permute.xlu1 %v2530_v47 }
  0xc3   : > { %v2394_v56 = vpop.eup %2393  ;;  %v474_v57 = vsel %vm301_vm0, %v402_v53, 0  ;;  %v398_v58 = vmul.f32 %v2392_v54, %v2630_v7  ;;  %v2377_v7 = vld [vmem:[%s2620_s6 + $0x10] sm:$0xff]  }
  0xc4   : > { %v422_v59 = vsel %vm301_vm0, %v401_v55, 0  ;;  %2268 = vmatpush3.bf16.xpose.msra.mxu1 %v474_v57  ;;  %v397_v60 = vmul.f32 %v2394_v56, %v2632_v8  ;;  %v2378_v8 = vld [vmem:[%s2620_s6 + $0x18] sm:$0xff]   ;;  %v2792_v53 = vld [vmem:[#allocation2 + $0x10] sm:$0xff]  ;;  %s2451_s6 = sshll.u32 %s2534_s15, 4  ;;  %s2452_s6 = int_to_ptr.vmem [resolvable:$false] %s2451_s6 }
  0xc5   : > { %2262 = vmatpush3.bf16.xpose.msra.mxu0 %v422_v59  ;;  %2279 = vmatprep.subr.bf16.mxu1 %v2527_v28  ;;  %v2802_v57 = vld [vmem:[#allocation2 + $0x18] sm:$0xff]  ;;  %s2453_s7 = scalar_lea.vmem %s2452_s6, 256  ;;  %p2454_p1 = scmp.lt.s32.totalorder %s2950_s27, %s2452_s6 }
  0xc6   : > { %v2396_v61 = vpop.eup %2395  ;;  %2273 = vmatprep.subr.bf16.mxu0 %v2527_v28  ;;  %v403_v62 = vpack.c.bf16 %v398_v58, %v397_v60  ;;  %p2455_p2 = scmp.lt.s32.totalorder %s2453_s7, %s2447_s5 }
  0xc7   : > { %v2398_v63 = vpop.eup %2397  ;;  %v400_v1 = vmul.f32 %v2396_v61, %v2655_v20  ;;  %v2811_v61 = vld [vmem:[#allocation2 + $0x20] sm:$0xff] }
  0xc8   : > { %v399_v3 = vmul.f32 %v2398_v63, %v2657_v21  ;;  %v526_v4 = vsel %vm301_vm0, %v403_v62, 0  ;;  %p2456_p3 = por %p2455_p2, %p2454_p1 }
  0xca   : > { %v404_v5 = vpack.c.bf16 %v400_v1, %v399_v3  ;;  %v2821_v1 = vld [vmem:[#allocation2 + $0x28] sm:$0xff]  ;;  %p2457_p5 = pnand %p2456_p3, %p2450_p0 }
  0xcb   : > { %2270 = vmatmul.mubr.msk.bf16.vlgmr.msra.gmra.mrb[0].mxu1 %vm301_vm0, %v2376_v0 }
  0xcc   : > { %2264 = vmatmul.mubr.msk.bf16.vlgmr.msra.gmra.mrb[0].mxu0 %vm301_vm0, %v2375_v2  ;;  %v578_v6 = vsel %vm301_vm0, %v404_v5, 0  ;;  %2281 = vmatprep.mubr.msk.bf16.mxu1 %vm2528_vm1, %v2527_v28  ;;  %v2830_v5 = vld [vmem:[#allocation2 + $0x30] sm:$0xff] }
  0xcd   : > { %2274 = vmatpush3.bf16.xpose.msra.mxu0 %v526_v4  ;;  %2280 = vmatpush3.bf16.xpose.msra.mxu1 %v578_v6 }
  0xce   : > { %2275 = vmatprep.mubr.msk.bf16.mxu0 %vm2528_vm1, %v2527_v28  ;;  %2285 = vmatprep.subr.bf16.mxu0 %v2527_v28 }
  0xcf   : > { %2291 = vmatprep.subr.bf16.mxu1 %v2527_v28 }
  0xd4   : > { %2276 = vmatmul.mubr.msk.bf16.vlgmr.msra.gmra.mrb[4].mxu0 %vm301_vm0, %v2377_v7  ;;  %2282 = vmatmul.mubr.msk.bf16.vlgmr.msra.gmra.mrb[4].mxu1 %vm301_vm0, %v2378_v8 }
  0xd5   : > { %2287 = vmatprep.mubr.msk.bf16.mxu0 %vm2528_vm1, %v2527_v28  ;;  %2293 = vmatprep.mubr.msk.bf16.mxu1 %vm2528_vm1, %v2527_v28 }
 0x19e   : > { %v510_v14 = vpop.f32.mrb[0].mxu1 }
 0x19f   : > { %v458_v15 = vpop.f32.mrb[0].mxu0  ;;  %v2271_v16 = vpop.f32.mrb[1].mxu1  ;;  %v2749_v19 = vsel %vm631_vm3, -50000.0, %v510_v14 }
 0x1a0   : > { %v2746_v17 = vsel %vm631_vm3, -50000.0, %v458_v15  ;;  %v2265_v18 = vpop.f32.mrb[1].mxu0  ;;  %v513_v20 = vpop.f32.mrb[2].mxu1  ;;  %v660_v27 = vsel %vm653_vm4, %v2749_v19, -inf  ;;  %v2379_v16 = vld [vmem:[%s2637_s9] sm:$0xff]  }
 0x1a1   : > { %v461_v21 = vpop.f32.mrb[2].mxu0  ;;  %v654_v22 = vsel %vm653_vm4, %v2746_v17, -inf  ;;  %v2272_v23 = vpop.f32.mrb[3].mxu1  ;;  %v2761_v29 = vsel %vm632_vm5, -50000.0, %v513_v20  ;;  %2286 = vmatpush3.bf16.msra.mxu0 %v2379_v16  ;;  %v2380_v18 = vld [vmem:[%s2637_s9 + $0x8] sm:$0xff]  }
 0x1a2   : > { %v2754_v24 = vsel %vm632_vm5, -50000.0, %v461_v21  ;;  %655 = vmax.xlane.f32.xlu0 %v654_v22  ;;  %v2266_v25 = vpop.f32.mrb[3].mxu0  ;;  %v663_v30 = vsel %vm653_vm4, %v2761_v29, -inf  ;;  %2297 = vmatprep.subr.bf16.mxu0 %v2527_v28 }
 0x1a3   : > { %v657_v26 = vsel %vm653_vm4, %v2754_v24, -inf  ;;  %2292 = vmatpush3.bf16.msra.mxu1 %v2380_v18 }
 0x1a4   : > { %658 = vmax.xlane.f32.xlu1 %v657_v26  ;;  %2303 = vmatprep.subr.bf16.mxu1 %v2527_v28 }
 0x1a6   : > { %661 = vmax.xlane.f32.xlu0 %v660_v27 }
 0x1a7   : > { %v562_v31 = vpop.f32.mrb[4].mxu0  ;;  %v614_v32 = vpop.f32.mrb[4].mxu1 }
 0x1a8   : > { %664 = vmax.xlane.f32.xlu1 %v663_v30  ;;  %v2766_v33 = vsel %vm631_vm3, -50000.0, %v562_v31  ;;  %v2277_v34 = vpop.f32.mrb[5].mxu0  ;;  %v2769_v35 = vsel %vm631_vm3, -50000.0, %v614_v32  ;;  %v2283_v36 = vpop.f32.mrb[5].mxu1 }
 0x1a9   : > { %v565_v37 = vpop.f32.mrb[6].mxu0  ;;  %v617_v38 = vpop.f32.mrb[6].mxu1  ;;  %v666_v39 = vsel %vm653_vm4, %v2766_v33, -inf  ;;  %v672_v45 = vsel %vm653_vm4, %v2769_v35, -inf }
 0x1aa   : > { %v2774_v40 = vsel %vm632_vm5, -50000.0, %v565_v37  ;;  %v2278_v41 = vpop.f32.mrb[7].mxu0  ;;  %v2777_v42 = vsel %vm632_vm5, -50000.0, %v617_v38  ;;  %667 = vmax.xlane.f32.xlu0 %v666_v39  ;;  %v2284_v43 = vpop.f32.mrb[7].mxu1 }
 0x1ab   : > { %v669_v44 = vsel %vm653_vm4, %v2774_v40, -inf  ;;  %v675_v46 = vsel %vm653_vm4, %v2777_v42, -inf }
 0x1ac   : > { %670 = vmax.xlane.f32.xlu1 %v669_v44 }
 0x1ae   : > { %673 = vmax.xlane.f32.xlu0 %v672_v45 }
 0x1b0   : > { %676 = vmax.xlane.f32.xlu1 %v675_v46  ;;  %v2381_v46 = vld [vmem:[%s2637_s9 + $0x10] sm:$0xff]  }
 0x22f   : > { %v656_v49 = vpop.xlane.xlu0 %655 }
 0x230   : > { %v2790_v51 = vmax.f32 %v2785_v48, %v656_v49 }
 0x231   : > { %v659_v52 = vpop.xlane.xlu1 %658 }
 0x232   : > { %v686_v54 = vsub.f32 %v2785_v48, %v2790_v51  ;;  %1107 = vst.msk [vmem:[#allocation2] sm:$0xff] %vm284_vm2, %v2790_v51  ;;  %v2799_v55 = vmax.f32 %v2787_v50, %v659_v52  ;;  %712 = vperm.xlu0 %2373, %v2790_v51   ;;  %v780_v48 = vld [vmem:[#allocation3 + $0x30] sm:$0xff] }
 0x233   : > { %v662_v56 = vpop.xlane.xlu0 %661 }
 0x234   : > { %v687_v58 = vsub.f32 %v2787_v50, %v2799_v55  ;;  %1108 = vst.msk [vmem:[#allocation2 + $0x8] sm:$0xff] %vm284_vm2, %v2799_v55  ;;  %v2809_v59 = vmax.f32 %v2792_v53, %v662_v56  ;;  %v2382_v56 = vld [vmem:[%s2637_s9 + $0x18] sm:$0xff]  }
 0x235   : > { %v665_v60 = vpop.xlane.xlu1 %664 }
 0x236   : > { %v688_v62 = vsub.f32 %v2792_v53, %v2809_v59  ;;  %1109 = vst.msk [vmem:[#allocation2 + $0x10] sm:$0xff] %vm284_vm2, %v2809_v59  ;;  %v2818_v63 = vmax.f32 %v2802_v57, %v665_v60  ;;  %722 = vperm.xlu1 %2374, %v2809_v59  }
 0x237   : > { %v668_v0 = vpop.xlane.xlu0 %667 }
 0x238   : > { %v689_v2 = vsub.f32 %v2802_v57, %v2818_v63  ;;  %1110 = vst.msk [vmem:[#allocation2 + $0x18] sm:$0xff] %vm284_vm2, %v2818_v63  ;;  %v2828_v3 = vmax.f32 %v2811_v61, %v668_v0 }
 0x239   : > { %v671_v4 = vpop.xlane.xlu1 %670 }
 0x23a   : > { %717 = vperm.xlu1 %2374, %v2799_v55   ;;  %v690_v6 = vsub.f32 %v2811_v61, %v2828_v3  ;;  %1111 = vst.msk [vmem:[#allocation2 + $0x20] sm:$0xff] %vm284_vm2, %v2828_v3  ;;  %v2838_v7 = vmax.f32 %v2821_v1, %v671_v4 }
 0x23b   : > { %v674_v8 = vpop.xlane.xlu0 %673 }
 0x23c   : > { %v691_v10 = vsub.f32 %v2821_v1, %v2838_v7  ;;  %1112 = vst.msk [vmem:[#allocation2 + $0x28] sm:$0xff] %vm284_vm2, %v2838_v7  ;;  %v2847_v11 = vmax.f32 %v2830_v5, %v674_v8 }
 0x23d   : > { %v677_v12 = vpop.xlane.xlu1 %676 }
 0x23e   : > { %727 = vperm.xlu1 %2374, %v2818_v63   ;;  %v692_v13 = vsub.f32 %v2830_v5, %v2847_v11  ;;  %1113 = vst.msk [vmem:[#allocation2 + $0x30] sm:$0xff] %vm284_vm2, %v2847_v11  ;;  %v2855_v14 = vmax.f32 %v2840_v9, %v677_v12  ;;  %v694_v5 = vmul.f32 1.442695, %v686_v54 }
 0x240   : > { %v693_v15 = vsub.f32 %v2840_v9, %v2855_v14  ;;  %1114 = vst.msk [vmem:[#allocation2 + $0x38] sm:$0xff] %vm284_vm2, %v2855_v14  ;;  %v706_v57 = vmul.f32 1.442695, %v692_v13 }
 0x242   : > { %732 = vperm.xlu1 %2374, %v2828_v3   ;;  %v708_v53 = vmul.f32 1.442695, %v693_v15  ;;  %v776_v3 = vld [vmem:[#allocation3 + $0x10] sm:$0xff] }
 0x246   : > { %742 = vperm.xlu1 %2374, %v2847_v11  }
 0x24a   : > { %737 = vperm.xlu1 %2374, %v2838_v7  }
 0x24e   : > { %747 = vperm.xlu1 %2374, %v2855_v14   ;;  %v778_v14 = vld [vmem:[#allocation3 + $0x20] sm:$0xff] }
 0x2b1   : > { %v713_v20 = vpop.permute.xlu0 %712 }
 0x2b2   : > { %v750_v21 = vsub.f32 %v2746_v17, %v713_v20 }
 0x2b4   : > { %v758_v26 = vmul.f32 1.442695, %v750_v21 }
 0x2b5   : > { %v723_v22 = vpop.permute.xlu1 %722 }
 0x2b6   : > { %v752_v23 = vsub.f32 %v2749_v19, %v723_v22 }
 0x2b8   : > { %v762_v25 = vmul.f32 1.442695, %v752_v23 }
 0x2b9   : > { %v718_v27 = vpop.permute.xlu1 %717 }
 0x2ba   : > { %2399 = vpow2.f32 %v762_v25  ;;  %v751_v30 = vsub.f32 %v2754_v24, %v718_v27 }
 0x2bb   : > { %2401 = vpow2.f32 %v758_v26  ;;  %v698_v26 = vmul.f32 1.442695, %v688_v62 }
 0x2bc   : > { %v760_v31 = vmul.f32 1.442695, %v751_v30  ;;  %v700_v30 = vmul.f32 1.442695, %v689_v2 }
 0x2bd   : > { %v728_v32 = vpop.permute.xlu1 %727 }
 0x2be   : > { %2403 = vpow2.f32 %v760_v31  ;;  %v753_v34 = vsub.f32 %v2761_v29, %v728_v32  ;;  %v704_v31 = vmul.f32 1.442695, %v691_v10  ;;  %v702_v32 = vmul.f32 1.442695, %v690_v6  ;;  %v777_v10 = vld [vmem:[#allocation3 + $0x18] sm:$0xff] }
 0x2c0   : > { %v764_v36 = vmul.f32 1.442695, %v753_v34  ;;  %v696_v34 = vmul.f32 1.442695, %v687_v58 }
 0x2c1   : > { %v733_v37 = vpop.permute.xlu1 %732 }
 0x2c2   : > { %2405 = vpow2.f32 %v764_v36  ;;  %v754_v17 = vsub.f32 %v2766_v33, %v733_v37 }
 0x2c4   : > { %v2400_v38 = vpop.eup %2399  ;;  %v766_v19 = vmul.f32 1.442695, %v754_v17 }
 0x2c5   : > { %v743_v39 = vpop.permute.xlu1 %742  ;;  %v796_v41 = vsel %vm653_vm4, %v2400_v38, 0.0  ;;  %v2402_v43 = vpop.eup %2401 }
 0x2c6   : > { %2407 = vpow2.f32 %v766_v19  ;;  %v756_v24 = vsub.f32 %v2769_v35, %v743_v39  ;;  %797 = vadd.xlane.f32.xlu1 %v796_v41  ;;  %v774_v39 = vld [vmem:[#allocation3] sm:$0xff]  ;;  %v779_v41 = vld [vmem:[#allocation3 + $0x28] sm:$0xff] }
 0x2c8   : > { %v2404_v44 = vpop.eup %2403  ;;  %v770_v45 = vmul.f32 1.442695, %v756_v24 }
 0x2c9   : > { %v738_v29 = vpop.permute.xlu1 %737  ;;  %v887_v47 = vpack.c.bf16 %v2404_v44, %v2402_v43  ;;  %v793_v27 = vsel %vm653_vm4, %v2404_v44, 0.0 }
 0x2ca   : > { %2409 = vpow2.f32 %v770_v45  ;;  %v755_v49 = vsub.f32 %v2774_v40, %v738_v29  ;;  %v781_v45 = vld [vmem:[#allocation3 + $0x38] sm:$0xff] }
 0x2cb   : > { %2288 = vmatmul.mubr.msk.bf16.vlgmr.msra.gmra.mrb[8].mxu0 %vm653_vm4, %v887_v47 }
 0x2cc   : > { %v2406_v33 = vpop.eup %2405  ;;  %v768_v52 = vmul.f32 1.442695, %v755_v49  ;;  %2298 = vmatpush3.bf16.msra.mxu0 %v2381_v46  ;;  %2299 = vmatprep.mubr.msk.bf16.mxu0 %vm2528_vm1, %v2527_v28 }
 0x2cd   : > { %v748_v35 = vpop.permute.xlu1 %747  ;;  %v799_v60 = vsel %vm653_vm4, %v2406_v33, 0.0  ;;  %v888_v0 = vpack.c.bf16 %v2406_v33, %v2400_v38 }
 0x2ce   : > { %2411 = vpow2.f32 %v768_v52  ;;  %v757_v4 = vsub.f32 %v2777_v42, %v748_v35  ;;  %800 = vadd.xlane.f32.xlu0 %v799_v60  ;;  %v790_v42 = vsel %vm653_vm4, %v2402_v43, 0.0  ;;  %v775_v35 = vld [vmem:[#allocation3 + $0x8] sm:$0xff] }
 0x2cf   : > { %2294 = vmatmul.mubr.msk.bf16.vlgmr.msra.gmra.mrb[8].mxu1 %vm653_vm4, %v888_v0 }
 0x2d0   : > { %v2408_v40 = vpop.eup %2407  ;;  %v772_v8 = vmul.f32 1.442695, %v757_v4  ;;  %2304 = vmatpush3.bf16.msra.mxu1 %v2382_v56  ;;  %2305 = vmatprep.mubr.msk.bf16.mxu1 %vm2528_vm1, %v2527_v28 }
 0x2d1   : > { %v802_v12 = vsel %vm653_vm4, %v2408_v40, 0.0 }
 0x2d2   : > { %2413 = vpow2.f32 %v772_v8  ;;  %803 = vadd.xlane.f32.xlu0 %v802_v12 }
 0x2d3   : > { %2415 = vpow2.f32 %v698_v26 }
 0x2d4   : > { %v2410_v16 = vpop.eup %2409  ;;  %2417 = vpow2.f32 %v700_v30 }
 0x2d5   : > { %v808_v18 = vsel %vm653_vm4, %v2410_v16, 0.0  ;;  %2419 = vpow2.f32 %v704_v31 }
 0x2d6   : > { %809 = vadd.xlane.f32.xlu0 %v808_v18  ;;  %2421 = vpow2.f32 %v702_v32 }
 0x2d7   : > { %2423 = vpow2.f32 %v708_v53  ;;  %v834_v53 = vld [vmem:[#allocation4 + $0x18] sm:$0xff] }
 0x2d8   : > { %v2412_v20 = vpop.eup %2411  ;;  %2425 = vpow2.f32 %v706_v57 }
 0x2d9   : > { %v805_v21 = vsel %vm653_vm4, %v2412_v20, 0.0  ;;  %v889_v22 = vpack.c.bf16 %v2412_v20, %v2408_v40  ;;  %2427 = vpow2.f32 %v694_v5 }
 0x2da   : > { %791 = vadd.xlane.f32.xlu0 %v790_v42  ;;  %806 = vadd.xlane.f32.xlu1 %v805_v21 }
 0x2db   : > { %2300 = vmatmul.mubr.msk.bf16.vlgmr.msra.gmra.mrb[12].mxu0 %vm653_vm4, %v889_v22 }
 0x2dc   : > { %v2414_v23 = vpop.eup %2413 }
 0x2dd   : > { %v811_v28 = vsel %vm653_vm4, %v2414_v23, 0.0  ;;  %v890_v25 = vpack.c.bf16 %v2414_v23, %v2410_v16  ;;  %v2416_v59 = vpop.eup %2415 }
 0x2de   : > { %812 = vadd.xlane.f32.xlu1 %v811_v28  ;;  %v2418_v62 = vpop.eup %2417  ;;  %v784_v6 = vmul.f32 %v2416_v59, %v776_v3 }
 0x2df   : > { %2306 = vmatmul.mubr.msk.bf16.vlgmr.msra.gmra.mrb[12].mxu1 %vm653_vm4, %v890_v25  ;;  %v2420_v63 = vpop.eup %2419  ;;  %v785_v11 = vmul.f32 %v2418_v62, %v777_v10 }
 0x2e0   : > { %v2422_v61 = vpop.eup %2421  ;;  %v787_v55 = vmul.f32 %v2420_v63, %v779_v41 }
 0x2e1   : > { %v2424_v1 = vpop.eup %2423  ;;  %v786_v37 = vmul.f32 %v2422_v61, %v778_v14 }
 0x2e2   : > { %794 = vadd.xlane.f32.xlu1 %v793_v27  ;;  %v2426_v2 = vpop.eup %2425  ;;  %v789_v33 = vmul.f32 %v2424_v1, %v781_v45  ;;  %v833_v27 = vld [vmem:[#allocation4 + $0x10] sm:$0xff] }
 0x2e3   : > { %v788_v54 = vmul.f32 %v2426_v2, %v780_v48  ;;  %v2428_v38 = vpop.eup %2427 }
 0x2e4   : > { %v782_v50 = vmul.f32 %v2428_v38, %v774_v39 }
 0x2f0   : > { %851 = vperm.xlu0 %2373, %v2416_v59  }
 0x2f3   : > { %856 = vperm.xlu1 %2374, %v2418_v62  }
 0x2f4   : > { %866 = vperm.xlu0 %2373, %v2420_v63  }
 0x2f7   : > { %861 = vperm.xlu1 %2374, %v2422_v61  }
 0x2f8   : > { %876 = vperm.xlu0 %2373, %v2424_v1  }
 0x2fb   : > { %871 = vperm.xlu1 %2374, %v2426_v2  }
 0x353   : > { %v798_v7 = vpop.xlane.xlu1 %797 }
 0x354   : > { %v816_v9 = vadd.f32 %v798_v7, %v784_v6 }
 0x356   : > { %825 = vst.msk [vmem:[#allocation3 + $0x10] sm:$0xff] %vm284_vm2, %v816_v9 }
 0x35b   : > { %v801_v13 = vpop.xlane.xlu0 %800 }
 0x35c   : > { %v817_v15 = vadd.f32 %v801_v13, %v785_v11  ;;  %v835_v11 = vld [vmem:[#allocation4 + $0x20] sm:$0xff]  ;;  %v836_v13 = vld [vmem:[#allocation4 + $0x28] sm:$0xff] }
 0x35d   : > { %v1894_v36 = vld [vmem:[#allocation3 + $0x10] sm:$0xff] }
 0x35e   : > { %826 = vst.msk [vmem:[#allocation3 + $0x18] sm:$0xff] %vm284_vm2, %v817_v15  ;;  %2429 = vrcp.f32 %v1894_v36  ;;  %v837_v15 = vld [vmem:[#allocation4 + $0x30] sm:$0xff] }
 0x35f   : > { %v804_v17 = vpop.xlane.xlu0 %803  ;;  %2431 = vpow2.f32 %v696_v34 }
 0x360   : > { %v818_v51 = vadd.f32 %v804_v17, %v786_v37 }
 0x362   : > { %827 = vst.msk [vmem:[#allocation3 + $0x20] sm:$0xff] %vm284_vm2, %v818_v51  ;;  %v838_v51 = vld [vmem:[#allocation4 + $0x38] sm:$0xff] }
 0x363   : > { %v810_v19 = vpop.xlane.xlu0 %809 }
 0x364   : > { %v820_v24 = vadd.f32 %v810_v19, %v788_v54 }
 0x365   : > { %v1895_v43 = vld [vmem:[#allocation3 + $0x18] sm:$0xff] }
 0x366   : > { %829 = vst.msk [vmem:[#allocation3 + $0x30] sm:$0xff] %vm284_vm2, %v820_v24  ;;  %2433 = vrcp.f32 %v1895_v43 }
 0x367   : > { %v792_v58 = vpop.xlane.xlu0 %791  ;;  %v807_v44 = vpop.xlane.xlu1 %806 }
 0x368   : > { %v2430_v46 = vpop.eup %2429  ;;  %v814_v29 = vadd.f32 %v792_v58, %v782_v50  ;;  %v819_v47 = vadd.f32 %v807_v44, %v787_v55 }
 0x369   : > { %1938 = vperm.xlu1 %2374, %v2430_v46   ;;  %v1896_v49 = vld [vmem:[#allocation3 + $0x20] sm:$0xff]  ;;  %v2432_v52 = vpop.eup %2431 }
 0x36a   : > { %823 = vst.msk [vmem:[#allocation3] sm:$0xff] %vm284_vm2, %v814_v29  ;;  %828 = vst.msk [vmem:[#allocation3 + $0x28] sm:$0xff] %vm284_vm2, %v819_v47  ;;  %2435 = vrcp.f32 %v1896_v49  ;;  %v783_v4 = vmul.f32 %v2432_v52, %v775_v35 }
 0x36b   : > { %v813_v56 = vpop.xlane.xlu1 %812 }
 0x36c   : > { %v821_v60 = vadd.f32 %v813_v56, %v789_v33 }
 0x36d   : > { %v1898_v0 = vld [vmem:[#allocation3 + $0x30] sm:$0xff] }
 0x36e   : > { %830 = vst.msk [vmem:[#allocation3 + $0x38] sm:$0xff] %vm284_vm2, %v821_v60  ;;  %2437 = vrcp.f32 %v1898_v0 }
 0x36f   : > { %v795_v40 = vpop.xlane.xlu1 %794  ;;  %v852_v30 = vpop.permute.xlu0 %851 }
 0x370   : > { %v2434_v8 = vpop.eup %2433  ;;  %v815_v12 = vadd.f32 %v795_v40, %v783_v4  ;;  %v881_v62 = vmul.f32 %v852_v30, %v833_v27 }
 0x371   : > { %1943 = vperm.xlu0 %2373, %v2434_v8   ;;  %v1897_v16 = vld [vmem:[#allocation3 + $0x28] sm:$0xff]  ;;  %v1892_v18 = vld [vmem:[#allocation3] sm:$0xff] }
 0x372   : > { %824 = vst.msk [vmem:[#allocation3 + $0x8] sm:$0xff] %vm284_vm2, %v815_v12  ;;  %2439 = vrcp.f32 %v1897_v16 }
 0x373   : > { %2441 = vrcp.f32 %v1892_v18  ;;  %v857_v57 = vpop.permute.xlu1 %856  ;;  %v867_v10 = vpop.permute.xlu0 %866  ;;  %v831_v18 = vld [vmem:[#allocation4] sm:$0xff] }
 0x374   : > { %v2436_v20 = vpop.eup %2435  ;;  %v882_v1 = vmul.f32 %v857_v57, %v834_v53  ;;  %v884_v37 = vmul.f32 %v867_v10, %v836_v13  ;;  %v832_v53 = vld [vmem:[#allocation4 + $0x8] sm:$0xff] }
 0x375   : > { %1968 = vperm.xlu1 %2374, %v2436_v20   ;;  %v1899_v42 = vld [vmem:[#allocation3 + $0x38] sm:$0xff] }
 0x376   : > { %2443 = vrcp.f32 %v1899_v42 }
 0x377   : > { %v862_v5 = vpop.permute.xlu1 %861  ;;  %v877_v54 = vpop.permute.xlu0 %876 }
 0x378   : > { %v2438_v21 = vpop.eup %2437  ;;  %v883_v14 = vmul.f32 %v862_v5, %v835_v11  ;;  %v886_v43 = vmul.f32 %v877_v54, %v838_v51 }
 0x379   : > { %1998 = vperm.xlu1 %2374, %v2438_v21   ;;  %v1893_v22 = vld [vmem:[#allocation3 + $0x8] sm:$0xff] }
 0x37a   : > { %2445 = vrcp.f32 %v1893_v22 }
 0x37b   : > { %v872_v34 = vpop.permute.xlu1 %871 }
 0x37c   : > { %v2440_v23 = vpop.eup %2439  ;;  %v885_v19 = vmul.f32 %v872_v34, %v837_v15 }
 0x37d   : > { %841 = vperm.xlu1 %2374, %v2428_v38   ;;  %1973 = vperm.xlu0 %2373, %v2440_v23   ;;  %v2442_v28 = vpop.eup %2441 }
 0x380   : > { %v2444_v25 = vpop.eup %2443 }
 0x381   : > { %1912 = vperm.xlu1 %2374, %v2442_v28   ;;  %2003 = vperm.xlu0 %2373, %v2444_v25  }
 0x384   : > { %v2446_v26 = vpop.eup %2445 }
 0x385   : > { %846 = vperm.xlu0 %2373, %v2432_v52  }
 0x389   : > { %1917 = vperm.xlu0 %2373, %v2446_v26  }
 0x39e   : > { %v2927_v31 = vpop.f32.mrb[8].mxu0 }
 0x39f   : > { %v2289_v32 = vpop.f32.mrb[9].mxu0 }
 0x3a0   : > { %v2929_v59 = vpop.f32.mrb[10].mxu0 }
 0x3a1   : > { %v2290_v63 = vpop.f32.mrb[11].mxu0 }
 0x3a2   : > { %v984_v61 = vpop.f32.mrb[8].mxu1 }
 0x3a3   : > { %v1093_v2 = vadd.f32 %v984_v61, %v881_v62  ;;  %v2295_v3 = vpop.f32.mrb[9].mxu1 }
 0x3a4   : > { %v987_v6 = vpop.f32.mrb[10].mxu1 }
 0x3a5   : > { %1101 = vst.msk [vmem:[#allocation4 + $0x10] sm:$0xff] %vm301_vm0, %v1093_v2  ;;  %v1094_v7 = vadd.f32 %v987_v6, %v882_v1  ;;  %v2296_v9 = vpop.f32.mrb[11].mxu1 }
 0x3a7   : > { %1102 = vst.msk [vmem:[#allocation4 + $0x18] sm:$0xff] %vm301_vm0, %v1094_v7 }
 0x3ac   : > { %v1934_v46 = vld [vmem:[#allocation4 + $0x10] sm:$0xff] }
 0x3ae   : > { %v1034_v36 = vpop.f32.mrb[12].mxu0  ;;  %v1935_v52 = vld [vmem:[#allocation4 + $0x18] sm:$0xff] }
 0x3af   : > { %v1095_v17 = vadd.f32 %v1034_v36, %v883_v14  ;;  %v2301_v48 = vpop.f32.mrb[13].mxu0 }
 0x3b0   : > { %v1037_v38 = vpop.f32.mrb[14].mxu0 }
 0x3b1   : > { %1103 = vst.msk [vmem:[#allocation4 + $0x20] sm:$0xff] %vm301_vm0, %v1095_v17  ;;  %v1096_v39 = vadd.f32 %v1037_v38, %v884_v37  ;;  %v2302_v41 = vpop.f32.mrb[15].mxu0 }
 0x3b2   : > { %v1084_v24 = vpop.f32.mrb[12].mxu1 }
 0x3b3   : > { %1104 = vst.msk [vmem:[#allocation4 + $0x28] sm:$0xff] %vm301_vm0, %v1096_v39  ;;  %v1097_v50 = vadd.f32 %v1084_v24, %v885_v19  ;;  %v2307_v55 = vpop.f32.mrb[13].mxu1 }
 0x3b4   : > { %v1087_v58 = vpop.f32.mrb[14].mxu1 }
 0x3b5   : > { %1105 = vst.msk [vmem:[#allocation4 + $0x30] sm:$0xff] %vm301_vm0, %v1097_v50  ;;  %v1098_v44 = vadd.f32 %v1087_v58, %v886_v43  ;;  %v2308_v45 = vpop.f32.mrb[15].mxu1 }
 0x3b7   : > { %1106 = vst.msk [vmem:[#allocation4 + $0x38] sm:$0xff] %vm301_vm0, %v1098_v44 }
 0x3b8   : > { %v1964_v0 = vld [vmem:[#allocation4 + $0x20] sm:$0xff] }
 0x3ba   : > { %v1965_v21 = vld [vmem:[#allocation4 + $0x28] sm:$0xff] }
 0x3bc   : > { %v1994_v8 = vld [vmem:[#allocation4 + $0x30] sm:$0xff] }
 0x3be   : > { %v1995_v27 = vld [vmem:[#allocation4 + $0x38] sm:$0xff] }
 0x3e8   : > { %v1939_v29 = vpop.permute.xlu1 %1938 }
 0x3e9   : > { %v1946_v47 = vmul.f32 %v1939_v29, %v1934_v46 }
 0x3eb   : > { %v2219_v49 = vpack.c.bf16 %v1946_v47, %v1946_v47 }
 0x3ed   : > { %1954 = vrot.lane.b32.xlu1 %v2219_v49, %s2531_s10 }
 0x3f0   : > { %v1944_v33 = vpop.permute.xlu0 %1943 }
 0x3f1   : > { %v1947_v56 = vmul.f32 %v1944_v33, %v1935_v52 }
 0x3f3   : > { %v2220_v35 = vpack.c.bf16 %v1947_v56, %v1947_v56 }
 0x3f4   : > { %v1969_v60 = vpop.permute.xlu1 %1968 }
 0x3f5   : > { %v1976_v4 = vmul.f32 %v1969_v60, %v1964_v0  ;;  %1956 = vrot.lane.b32.xlu0 %v2220_v35, %s2531_s10 }
 0x3f7   : > { %v2221_v40 = vpack.c.bf16 %v1976_v4, %v1976_v4 }
 0x3f8   : > { %v1999_v12 = vpop.permute.xlu1 %1998 }
 0x3f9   : > { %v2006_v16 = vmul.f32 %v1999_v12, %v1994_v8  ;;  %1984 = vrot.lane.b32.xlu1 %v2221_v40, %s2532_s11 }
 0x3fb   : > { %v2223_v20 = vpack.c.bf16 %v2006_v16, %v2006_v16 }
 0x3fc   : > { %v1974_v42 = vpop.permute.xlu0 %1973  ;;  %v842_v22 = vpop.permute.xlu1 %841 }
 0x3fd   : > { %v1977_v23 = vmul.f32 %v1974_v42, %v1965_v21  ;;  %v879_v28 = vmul.f32 %v842_v22, %v831_v18  ;;  %2014 = vrot.lane.b32.xlu1 %v2223_v20, %s2533_s18 }
 0x3ff   : > { %v2222_v25 = vpack.c.bf16 %v1977_v23, %v1977_v23  ;;  %v1091_v26 = vadd.f32 %v2927_v31, %v879_v28 }
 0x400   : > { %v2004_v30 = vpop.permute.xlu0 %2003  ;;  %v1913_v1 = vpop.permute.xlu1 %1912 }
 0x401   : > { %1099 = vst.msk [vmem:[#allocation4] sm:$0xff] %vm301_vm0, %v1091_v26  ;;  %v2007_v32 = vmul.f32 %v2004_v30, %v1995_v27  ;;  %1986 = vrot.lane.b32.xlu0 %v2222_v25, %s2532_s11 }
 0x403   : > { %v2224_v57 = vpack.c.bf16 %v2007_v32, %v2007_v32 }
 0x404   : > { %v847_v62 = vpop.permute.xlu0 %846 }
 0x405   : > { %v880_v63 = vmul.f32 %v847_v62, %v832_v53  ;;  %2016 = vrot.lane.b32.xlu0 %v2224_v57, %s2533_s18 }
 0x407   : > { %v1092_v61 = vadd.f32 %v2929_v59, %v880_v63 }
 0x408   : > { %v1908_v2 = vld [vmem:[#allocation4] sm:$0xff]  ;;  %v1918_v6 = vpop.permute.xlu0 %1917 }
 0x409   : > { %v1920_v3 = vmul.f32 %v1913_v1, %v1908_v2  ;;  %1100 = vst.msk [vmem:[#allocation4 + $0x8] sm:$0xff] %vm301_vm0, %v1092_v61 }
 0x40b   : > { %v2217_v31 = vpack.c.bf16 %v1920_v3, %v1920_v3 }
 0x40d   : > { %1931 = vst.msk [vmem:[%s247_s23] sm:$0xf] %vm1930_vm6, %v2217_v31 }
 0x410   : > { %v1909_v7 = vld [vmem:[#allocation4 + $0x8] sm:$0xff] }
 0x411   : > { %v1921_v9 = vmul.f32 %v1918_v6, %v1909_v7 }
 0x413   : > { %v2218_v5 = vpack.c.bf16 %v1921_v9, %v1921_v9 }
 0x415   : > { %1932 = vst.msk [vmem:[%s247_s23 + $0x4] sm:$0xf] %vm1930_vm6, %v2218_v5 }
 0x45f   : > { %v1955_v10 = vpop.permute.xlu1 %1954 }
 0x460   : > { %1961 = vst.msk [vmem:[%s247_s23] sm:$0xf] %vm1960_vm7, %v1955_v10 }
 0x467   : > { %v1957_v11 = vpop.permute.xlu0 %1956 }
 0x468   : > { %1962 = vst.msk [vmem:[%s247_s23 + $0x4] sm:$0xf] %vm1960_vm7, %v1957_v11 }
 0x46b   : > { %v1985_v59 = vpop.permute.xlu1 %1984 }
 0x46c   : > { %1991 = vst.msk [vmem:[%s247_s23] sm:$0xf] %vm1990_vm8, %v1985_v59 }
 0x46f   : > { %v2015_v13 = vpop.permute.xlu1 %2014 }
 0x470   : > { %2021 = vst.msk [vmem:[%s247_s23] sm:$0xf] %vm2020_vm9, %v2015_v13 }
 0x473   : > { %v1987_v14 = vpop.permute.xlu0 %1986 }
 0x474   : > { %1992 = vst.msk [vmem:[%s247_s23 + $0x4] sm:$0xf] %vm1990_vm8, %v1987_v14 }
 0x477   : > { %v2017_v15 = vpop.permute.xlu0 %2016 }
 0x478   : > { %2022 = vst.msk [vmem:[%s247_s23 + $0x4] sm:$0xf] %vm2020_vm9, %v2017_v15 }
 0x479   : > { %2460 = shalt.err (!%p2457_p5)
}
 0x47a   : > { %s2461_s8 = scalar_lea.hbm %s2948_s30, 128  ;;  %s2465_s11 = scalar_lea.hbm %s3003_s3, 256 }
 0x47b   : > { %p2462_p6 = scmp.ne.s32.totalorder %s2948_s30, %s2461_s8  ;;  %p2466_p10 = scmp.lt.u32.totalorder %s2948_s30, %s3003_s3 }
 0x47c   : > { %p2467_p11 = scmp.lt.u32.totalorder %s2465_s11, %s2461_s8  ;;  %p2469_p13 = scmp.lt.u32.totalorder %s2461_s8, %s2948_s30 }
 0x47d   : > { %p2463_p7 = pnand %p2462_p6, %p2597_p4 }
 0x47e   : > { %p2468_p12 = por %p2467_p11, %p2466_p10 }
 0x47f   : > { %p2464_p9 = pneg %p2463_p7 }
 0x480   : > { %p2470_p0 = por %p2469_p13, %p2468_p12 }
 0x482   : > { %p2471_p1 = pnand %p2470_p0, %p2464_p9 }
 0x484   : > { %2474 = shalt.err (!%p2471_p1)
}
 0x485   : > { %s2535_s21 = smov 64   ;;  %s2536_s23 = smov 4  }
 0x486   : > { %2309 = dma.vmem_to_hbm [thread:$0]  (%p2597_p4), %s2950_s27, 128, %s2948_s30, %s2954_s4, %s2535_s21, %s2535_s21, %s2536_s23  }
 0x487 PF: > { %p2315_p2 = scmp.ge.s32.totalorder %s2525_s17, 2  ;;  %s2054_s26 = sand.u32 1, %s2505_s12  }
 0x488   : > { %s2055_s28 = scalar_lea.sflag [#allocation6], %s2054_s26 }
 0x489   : > { %p2312_p3 = pnand %p2315_p2, %p2604_p8 }
 0x48b   : > { %2500 = dma.done.wait (!%p2312_p3), %s2055_s28, 128  }
 0x48c   : > { %2502 = vsyncadd (!%p2312_p3), %s2055_s28, 4294967168  ;;  %s16_s17 = sadd.s32 1, %s2525_s17   ;;  %s3006_s12 = smov %s2509_s13 }
 0x48d   : > { %p13_p5 = scmp.ge.s32.totalorder %s16_s17, 4   ;;  %s3007_s13 = smov %s2513_s14 }
 0x48e   : > { %s3008_s14 = smov %s2610_s25  ;;  %s3009_s15 = smov %s2521_s16 }
 0x48f   : > { %s3010_s16 = smov %s3012_s20  ;;  %15 = sbr.rel (!%p13_p5) target bundleno = 4 (0x4), region = 92 }
 0x496   :  { %2060 = vsyncpa [#allocation6], 1 }
 0x497   :  { %2062 = vsyncpa [#allocation6 + $0x1], 1 }

</bundles_post_ra>
